<compile_context>
chip_gen: v5e
topology: v5e:2x2
jax: 0.10.0
libtpu: 0.0.40
codegen_flags: <defaults>
</compile_context>

<pallas_src>
import functools
import math

import jax
import jax.numpy as jnp
from jax.experimental import pallas as pl
from jax.experimental.pallas import tpu as pltpu


# ----------------------------- configuration --------------------------------
B = 2           # batch
C_IN = 4        # input channels
H = W = 16      # spatial
C_OUT = 8       # conv channels
EMB = 32        # embedding_size
NUM_CLASSES = 10
KH = KW = 3     # conv kernel

LANE = 128
C_PAD = LANE            # conv channels padded lane-dense
EMB_PAD = LANE          # embedding padded lane-dense
NC_PAD = LANE           # classes padded lane-dense

HP, WP = H + 2, W + 2   # spatially padded ('same' conv, padding=1)
PIX = HP * WP           # 324 padded pixels per image
PIX_PAD = 328           # multiple of 8, >= max tap offset (38) + HWP (288): no OOB reads
HWP = H * WP            # 288 conv output rows per image (incl. 2 junk cols per row)
N_TAP = KH * KW         # 9 taps

B_BLK = 1               # images per grid step (raise for bigger batches)
assert B % B_BLK == 0
GRID = B // B_BLK

# ArcFace hyperparameters
ARC_S = 30.0
ARC_M = 0.50
COS_M = math.cos(ARC_M)
SIN_M = math.sin(ARC_M)
TH = math.cos(math.pi - ARC_M)
MM = math.sin(math.pi - ARC_M) * ARC_M


# ------------------------------ Pallas kernels -------------------------------
def _encode_block(x_ref, convw_ref, convb_ref, fcw_ref, fcb_ref, poolrow_ref,
                  acc_scr, pooled_scr):
    """Encoder for one batch block: in-kernel im2col conv -> ReLU -> pool -> fc.

    x:       [B_BLK, PIX_PAD, C_IN] f32  (flattened, spatially padded NHWC image)
    convw:   [N_TAP, C_IN, C_PAD]   f32  (per-tap conv weights, lane padded)
    convb:   [1, C_PAD] f32   fcw: [C_PAD, EMB_PAD] f32   fcb: [1, EMB_PAD] f32
    poolrow: [1, HWP] f32 (1/(H*W) on valid columns, 0 on junk x >= W columns)
    returns  [B_BLK, EMB_PAD] f32 features (padded lanes are exactly zero)
    """
    for b in range(B_BLK):
        acc_scr[...] = jnp.zeros_like(acc_scr)
        # 3x3 'same' conv as 9 accumulating shifted tap matmuls: for output flat
        # position s = y*WP + x, tap (dy, dx) reads input flat row s + dy*WP + dx,
        # so every tap is a single contiguous row slice of the flattened image.
        # (v7x MRB accumulates these back-to-back matmuls in place; on v5e/v6e the
        #  += is a cheap VPU add on a [HWP, C_PAD] f32 block.)
        for t in range(N_TAP):
            off = (t // KW) * WP + (t % KW)
            x_tap = x_ref[b, pl.ds(off, HWP), :]                 # [HWP, C_IN] f32
            acc_scr[...] += jnp.dot(x_tap, convw_ref[t],
                                    preferred_element_type=jnp.float32)
        h = jnp.maximum(acc_scr[...] + convb_ref[...], 0.0)      # bias + ReLU (f32)
        # Global average pool as an MXU matmul (MXU is idle here; keeps XLU free and
        # avoids any reshape); pool row zeroes the junk (x >= W) columns.
        pooled_scr[pl.ds(b, 1), :] = jnp.dot(poolrow_ref[...], h,
                                             preferred_element_type=jnp.float32)
    feats = jnp.dot(pooled_scr[...], fcw_ref[...],
                    preferred_element_type=jnp.float32) + fcb_ref[...]
    return feats                                                  # [B_BLK, EMB_PAD]


def encoder_kernel(x_ref, convw_ref, convb_ref, fcw_ref, fcb_ref, poolrow_ref,
                   feat_ref, acc_scr, pooled_scr):
    """targets=None path: encoder only."""
    feats = _encode_block(x_ref, convw_ref, convb_ref, fcw_ref, fcb_ref,
                          poolrow_ref, acc_scr, pooled_scr)
    feat_ref[...] = feats[:, None, :].astype(feat_ref.dtype)


def fused_kernel(x_ref, convw_ref, convb_ref, fcw_ref, fcb_ref, poolrow_ref,
                 headw_ref, tgt_ref, feat_ref, out_ref, acc_scr, pooled_scr,
                 *, s, cos_m, sin_m, th, mm):
    """Fused encoder + ArcFace margin head; emits features AND logits.

    headw: [EMB_PAD, NC_PAD] f32 (columns pre-L2-normalized over real EMB dims)
    tgt:   [B] int32 in SMEM
    """
    feats = _encode_block(x_ref, convw_ref, convb_ref, fcw_ref, fcb_ref,
                          poolrow_ref, acc_scr, pooled_scr)
    feat_ref[...] = feats[:, None, :].astype(feat_ref.dtype)

    # Feature L2 normalization (padded lanes are exactly zero, so the norm over
    # EMB_PAD equals the norm over the real EMB dims).
    # NOTE: F.normalize clamps the norm at eps; rsqrt(sum+1e-12) is equivalent for
    # non-degenerate features.
    f_n = feats * jax.lax.rsqrt(
        jnp.sum(feats * feats, axis=-1, keepdims=True) + 1e-12)

    # f32 cosine matmul (review correctness concern: keep the value feeding
    # sqrt(1-c^2) and the threshold branch in f32).
    cosine = jnp.dot(f_n, headw_ref[...], preferred_element_type=jnp.float32)
    cosine = jnp.clip(cosine, -1.0 + 1e-7, 1.0 - 1e-7)

    sine = jnp.sqrt(jnp.maximum(1.0 - cosine * cosine, 0.0))
    phi = cosine * cos_m - sine * sin_m
    phi = jnp.where(cosine > th, phi, cosine - mm)                # easy_margin=False

    # One-hot from SMEM scalar targets vs class-lane iota.
    base = pl.program_id(0) * B_BLK
    row_iota = jax.lax.broadcasted_iota(jnp.int32, (B_BLK, NC_PAD), 0)
    col_iota = jax.lax.broadcasted_iota(jnp.int32, (B_BLK, NC_PAD), 1)
    onehot = jnp.zeros((B_BLK, NC_PAD), jnp.float32)
    for b in range(B_BLK):
        tgt_b = tgt_ref[base + b]
        onehot = jnp.where((row_iota == b) & (col_iota == tgt_b), 1.0, onehot)

    logits = s * (onehot * phi + (1.0 - onehot) * cosine)
    out_ref[...] = logits[:, None, :].astype(out_ref.dtype)


# ------------------------------ JAX glue -------------------------------------
def init_params():
    """Deterministic synthetic parameters; padded/pre-arranged for the kernels."""
    k = jax.random.PRNGKey(42)
    k1, k2, k3, k4, k5 = jax.random.split(k, 5)
    conv_w_t = 0.1 * jax.random.normal(k1, (C_OUT, C_IN, KH, KW), jnp.float32)
    conv_b = 0.05 * jax.random.normal(k2, (1, C_OUT), jnp.float32)
    fc_w = 0.1 * jax.random.normal(k3, (C_OUT, EMB), jnp.float32)
    fc_b = 0.05 * jax.random.normal(k4, (1, EMB), jnp.float32)
    head_w = 0.1 * jax.random.normal(k5, (NUM_CLASSES, EMB), jnp.float32)

    # Hoisted ArcFace weight L2 normalization (recompute after every update).
    head_w_n = head_w * jax.lax.rsqrt(
        jnp.sum(head_w * head_w, axis=-1, keepdims=True) + 1e-12)

    # [Cout, Cin, kh, kw] -> [kh, kw, Cin, Cout] -> per-tap [N_TAP, Cin, Cout].
    conv_w_tap = jnp.transpose(conv_w_t, (2, 3, 1, 0)).reshape(N_TAP, C_IN, C_OUT)

    # Constant pooling row: 1/(H*W) on valid columns (x < W), 0 on junk columns.
    valid = (jnp.arange(HWP) % WP) < W
    pool_row = jnp.where(valid, 1.0 / (H * W), 0.0).astype(jnp.float32).reshape(1, HWP)

    pad_last = lambda a, n: jnp.pad(a, [(0, 0)] * (a.ndim - 1) + [(0, n - a.shape[-1])])
    return dict(
        conv_w=pad_last(conv_w_tap, C_PAD),                     # [9, C_IN, C_PAD] f32
        conv_b=pad_last(conv_b, C_PAD),                         # [1, C_PAD] f32
        fc_w=jnp.pad(fc_w, ((0, C_PAD - C_OUT), (0, EMB_PAD - EMB))),
        fc_b=pad_last(fc_b, EMB_PAD),
        head_w_n=jnp.pad(head_w_n.T,
                         ((0, EMB_PAD - EMB), (0, NC_PAD - NUM_CLASSES))),
        pool_row=pool_row,
        # Unpadded copies, used only by the pure-JAX reference check in __main__.
        _raw=dict(conv_w_t=conv_w_t, conv_b=conv_b, fc_w=fc_w, fc_b=fc_b,
                  head_w_n=head_w_n),
    )


def _prep_images(images_nchw):
    """NCHW -> spatially padded NHWC, flattened per image to [B, PIX_PAD, C_IN] f32.

    This is the only wrapper-side image op (~1.3x the raw image bytes); the 9x
    im2col expansion happens inside the kernel via shifted tap matmuls.
    """
    x = jnp.transpose(images_nchw, (0, 2, 3, 1)).astype(jnp.float32)   # NHWC
    xp = jnp.pad(x, ((0, 0), (1, 1), (1, 1), (0, 0)))                  # [B,HP,WP,C]
    xf = xp.reshape(B, PIX, C_IN)                                      # free reshape
    return jnp.pad(xf, ((0, 0), (0, PIX_PAD - PIX), (0, 0)))


def _encoder_in_specs():
    return [
        pl.BlockSpec((B_BLK, PIX_PAD, C_IN), lambda i: (i, 0, 0)),      # image block
        pl.BlockSpec((N_TAP, C_IN, C_PAD), lambda i: (0, 0, 0)),        # conv taps
        pl.BlockSpec((1, C_PAD), lambda i: (0, 0)),                     # conv bias
        pl.BlockSpec((C_PAD, EMB_PAD), lambda i: (0, 0)),               # fc weight
        pl.BlockSpec((1, EMB_PAD), lambda i: (0, 0)),                   # fc bias
        pl.BlockSpec((1, HWP), lambda i: (0, 0)),                       # pool row
    ]


_SCRATCH = [pltpu.VMEM((HWP, C_PAD), jnp.float32),      # conv accumulator (per image)
            pltpu.VMEM((B_BLK, C_PAD), jnp.float32)]    # pooled features (per block)

_COMPILER_PARAMS = pltpu.CompilerParams(
    dimension_semantics=("parallel",),                  # megacore-shardable on v7x
    vmem_limit_bytes=32 * 1024 * 1024)                  # headroom; per-step use ~1 MiB


@jax.jit
def _features_fn(images, params):
    x = _prep_images(images)
    feat_pad = pl.pallas_call(
        encoder_kernel,
        out_shape=jax.ShapeDtypeStruct((B, 1, EMB_PAD), jnp.float32),
        grid=(GRID,),
        in_specs=_encoder_in_specs(),
        out_specs=pl.BlockSpec((B_BLK, 1, EMB_PAD), lambda i: (i, 0, 0)),
        scratch_shapes=_SCRATCH,
        compiler_params=_COMPILER_PARAMS,
    )(x, params["conv_w"], params["conv_b"], params["fc_w"], params["fc_b"],
      params["pool_row"])
    return feat_pad[:, 0, :EMB]


@jax.jit
def _fused_fn(images, targets, params):
    """One launch -> (features [B, EMB], margin logits [B, NUM_CLASSES])."""
    x = _prep_images(images)
    kernel = functools.partial(fused_kernel, s=ARC_S, cos_m=COS_M,
                               sin_m=SIN_M, th=TH, mm=MM)
    feat_pad, logits_pad = pl.pallas_call(
        kernel,
        out_shape=(jax.ShapeDtypeStruct((B, 1, EMB_PAD), jnp.float32),
                   jax.ShapeDtypeStruct((B, 1, NC_PAD), jnp.float32)),
        grid=(GRID,),
        in_specs=_encoder_in_specs() + [
            pl.BlockSpec((EMB_PAD, NC_PAD), lambda i: (0, 0)),          # head weight
            pl.BlockSpec(memory_space=pltpu.MemorySpace.SMEM),          # targets
        ],
        out_specs=(pl.BlockSpec((B_BLK, 1, EMB_PAD), lambda i: (i, 0, 0)),
                   pl.BlockSpec((B_BLK, 1, NC_PAD), lambda i: (i, 0, 0))),
        scratch_shapes=_SCRATCH,
        compiler_params=_COMPILER_PARAMS,
    )(x, params["conv_w"], params["conv_b"], params["fc_w"], params["fc_b"],
      params["pool_row"], params["head_w_n"], targets.astype(jnp.int32))
    return feat_pad[:, 0, :EMB], logits_pad[:, 0, :NUM_CLASSES]


def encoder_with_head_forward(images, targets, params):
    """Mirrors EncoderWithHead.forward: features if targets is None, else the
    margin-head outputs (the fused kernel also produces the features for free —
    use _fused_fn directly when a training step needs both)."""
    if targets is None:
        return _features_fn(images, params)
    _, logits = _fused_fn(images, targets, params)
    return logits


# --------------------------- pure-JAX reference ------------------------------
def _reference_forward(images, targets, raw):
    x = jnp.transpose(images, (0, 2, 3, 1)).astype(jnp.float32)
    xp = jnp.pad(x, ((0, 0), (1, 1), (1, 1), (0, 0)))
    cols = [xp[:, dy:dy + H, dx:dx + W, :] for dy in range(KH) for dx in range(KW)]
    patches = jnp.concatenate(cols, axis=-1).reshape(B, H * W, KH * KW * C_IN)
    convw2d = jnp.transpose(raw["conv_w_t"], (2, 3, 1, 0)).reshape(KH * KW * C_IN, C_OUT)
    hh = jnp.maximum(
        jnp.einsum("bpk,kc->bpc", patches, convw2d,
                   precision=jax.lax.Precision.HIGHEST) + raw["conv_b"], 0.0)
    pooled = hh.mean(axis=1)
    feats = jnp.dot(pooled, raw["fc_w"],
                    precision=jax.lax.Precision.HIGHEST) + raw["fc_b"]
    f_n = feats * jax.lax.rsqrt(jnp.sum(feats * feats, -1, keepdims=True) + 1e-12)
    cosine = jnp.clip(jnp.dot(f_n, raw["head_w_n"].T,
                              precision=jax.lax.Precision.HIGHEST),
                      -1.0 + 1e-7, 1.0 - 1e-7)
    sine = jnp.sqrt(jnp.maximum(1.0 - cosine * cosine, 0.0))
    phi = jnp.where(cosine > TH, cosine * COS_M - sine * SIN_M, cosine - MM)
    onehot = jax.nn.one_hot(targets, NUM_CLASSES, dtype=jnp.float32)
    return feats, ARC_S * (onehot * phi + (1.0 - onehot) * cosine)


# ------------------------------ main ------------------------------------------
if __name__ == "__main__":
    key = jax.random.PRNGKey(0)
    k_img, k_tgt = jax.random.split(key)
    images = jax.random.normal(k_img, (B, C_IN, H, W), jnp.float32)      # NCHW input
    targets = jax.random.randint(k_tgt, (B,), 0, NUM_CLASSES, jnp.int32)

    params = init_params()

    features = encoder_with_head_forward(images, None, params)          # [B, EMB]
    outputs = encoder_with_head_forward(images, targets, params)        # [B, NUM_CLASSES]
    jax.block_until_ready((features, outputs))

    assert features.shape == (B, EMB) and outputs.shape == (B, NUM_CLASSES)
    assert bool(jnp.all(jnp.isfinite(features))) and bool(jnp.all(jnp.isfinite(outputs)))

    # Correctness check against a pure-JAX (XLA) reference of the same math.
    ref_feats, ref_logits = _reference_forward(images, targets, params["_raw"])
    assert bool(jnp.allclose(features, ref_feats, atol=5e-3, rtol=1e-2)), "features mismatch"
    assert bool(jnp.allclose(outputs, ref_logits, atol=5e-2, rtol=1e-2)), "logits mismatch"

    print("KERNEL_OK")
</pallas_src>

<mosaic_0001>
module attributes {stable_mosaic.version = 11 : i64} {
  func.func @encoder_kernel(%arg0: i32, %arg1: memref<1x328x4xf32, #tpu.memory_space<vmem>>, %arg2: memref<9x4x128xf32, #tpu.memory_space<vmem>>, %arg3: memref<1x128xf32, #tpu.memory_space<vmem>>, %arg4: memref<128x128xf32, #tpu.memory_space<vmem>>, %arg5: memref<1x128xf32, #tpu.memory_space<vmem>>, %arg6: memref<1x288xf32, #tpu.memory_space<vmem>>, %arg7: memref<1x1x128xf32, #tpu.memory_space<vmem>>, %arg8: memref<288x128xf32, #tpu.memory_space<vmem>>, %arg9: memref<1x128xf32, #tpu.memory_space<vmem>>) attributes {dimension_semantics = [#tpu.dimension_semantics<parallel>], iteration_bounds = array<i64: 2>, scalar_prefetch = 0 : i64, scratch_operands = 2 : i64, tpu.core_type = #tpu.core_type<tc>, window_params = [{transform_indices = @transform_0, window_bounds = array<i64: 1, 328, 4>}, {pipeline_mode = #tpu.pipeline_mode<synchronous>, transform_indices = @transform_1, window_bounds = array<i64: 9, 4, 128>}, {pipeline_mode = #tpu.pipeline_mode<synchronous>, transform_indices = @transform_2, window_bounds = array<i64: 1, 128>}, {pipeline_mode = #tpu.pipeline_mode<synchronous>, transform_indices = @transform_3, window_bounds = array<i64: 128, 128>}, {pipeline_mode = #tpu.pipeline_mode<synchronous>, transform_indices = @transform_4, window_bounds = array<i64: 1, 128>}, {pipeline_mode = #tpu.pipeline_mode<synchronous>, transform_indices = @transform_5, window_bounds = array<i64: 1, 288>}, {transform_indices = @transform_6, window_bounds = array<i64: 1, 1, 128>}]} {
    %cst = arith.constant 0.000000e+00 : f32
    %0 = vector.broadcast %cst : f32 to vector<288x128xf32>
    %c0 = arith.constant 0 : index
    %c0_0 = arith.constant 0 : index
    %1 = vector.load %arg8[%c0, %c0_0] : memref<288x128xf32, #tpu.memory_space<vmem>>, vector<288x128xf32>
    tpu.vector_store %arg8[%c0, %c0_0], %0 {strides = array<i32>} : memref<288x128xf32, #tpu.memory_space<vmem>>, vector<288x128xf32>,
    %c0_1 = arith.constant 0 : index
    %c0_2 = arith.constant 0 : index
    %c0_3 = arith.constant 0 : index
    %2 = vector.load %arg1[%c0_1, %c0_2, %c0_3] : memref<1x328x4xf32, #tpu.memory_space<vmem>>, vector<1x288x4xf32>
    %3 = vector.shape_cast %2 : vector<1x288x4xf32> to vector<288x4xf32>
    %c0_4 = arith.constant 0 : index
    %c0_5 = arith.constant 0 : index
    %4 = vector.load %arg8[%c0_4, %c0_5] : memref<288x128xf32, #tpu.memory_space<vmem>>, vector<288x128xf32>
    %c0_6 = arith.constant 0 : index
    %c0_7 = arith.constant 0 : index
    %c0_8 = arith.constant 0 : index
    %5 = vector.load %arg2[%c0_6, %c0_7, %c0_8] : memref<9x4x128xf32, #tpu.memory_space<vmem>>, vector<1x4x128xf32>
    %6 = vector.shape_cast %5 : vector<1x4x128xf32> to vector<4x128xf32>
    %cst_9 = arith.constant dense<0.000000e+00> : vector<288x128xf32>
    %7 = tpu.matmul %3, %6, %cst_9 {dimension_numbers = #tpu.dot_dimension_numbers<[1], [0], [0], [1], [0, 0, 1, 1], [], []>} : vector<288x4xf32>, vector<4x128xf32>, vector<288x128xf32> -> vector<288x128xf32>
    %8 = arith.addf %4, %7 : vector<288x128xf32>
    %c0_10 = arith.constant 0 : index
    %c0_11 = arith.constant 0 : index
    %9 = vector.load %arg8[%c0_10, %c0_11] : memref<288x128xf32, #tpu.memory_space<vmem>>, vector<288x128xf32>
    tpu.vector_store %arg8[%c0_10, %c0_11], %8 {strides = array<i32>} : memref<288x128xf32, #tpu.memory_space<vmem>>, vector<288x128xf32>,
    %c0_12 = arith.constant 0 : index
    %c1 = arith.constant 1 : index
    %c0_13 = arith.constant 0 : index
    %10 = vector.load %arg1[%c0_12, %c1, %c0_13] : memref<1x328x4xf32, #tpu.memory_space<vmem>>, vector<1x288x4xf32>
    %11 = vector.shape_cast %10 : vector<1x288x4xf32> to vector<288x4xf32>
    %c0_14 = arith.constant 0 : index
    %c0_15 = arith.constant 0 : index
    %12 = vector.load %arg8[%c0_14, %c0_15] : memref<288x128xf32, #tpu.memory_space<vmem>>, vector<288x128xf32>
    %c1_16 = arith.constant 1 : index
    %c0_17 = arith.constant 0 : index
    %c0_18 = arith.constant 0 : index
    %13 = vector.load %arg2[%c1_16, %c0_17, %c0_18] : memref<9x4x128xf32, #tpu.memory_space<vmem>>, vector<1x4x128xf32>
    %14 = vector.shape_cast %13 : vector<1x4x128xf32> to vector<4x128xf32>
    %cst_19 = arith.constant dense<0.000000e+00> : vector<288x128xf32>
    %15 = tpu.matmul %11, %14, %cst_19 {dimension_numbers = #tpu.dot_dimension_numbers<[1], [0], [0], [1], [0, 0, 1, 1], [], []>} : vector<288x4xf32>, vector<4x128xf32>, vector<288x128xf32> -> vector<288x128xf32>
    %16 = arith.addf %12, %15 : vector<288x128xf32>
    %c0_20 = arith.constant 0 : index
    %c0_21 = arith.constant 0 : index
    %17 = vector.load %arg8[%c0_20, %c0_21] : memref<288x128xf32, #tpu.memory_space<vmem>>, vector<288x128xf32>
    tpu.vector_store %arg8[%c0_20, %c0_21], %16 {strides = array<i32>} : memref<288x128xf32, #tpu.memory_space<vmem>>, vector<288x128xf32>,
    %c0_22 = arith.constant 0 : index
    %c2 = arith.constant 2 : index
    %c0_23 = arith.constant 0 : index
    %18 = vector.load %arg1[%c0_22, %c2, %c0_23] : memref<1x328x4xf32, #tpu.memory_space<vmem>>, vector<1x288x4xf32>
    %19 = vector.shape_cast %18 : vector<1x288x4xf32> to vector<288x4xf32>
    %c0_24 = arith.constant 0 : index
    %c0_25 = arith.constant 0 : index
    %20 = vector.load %arg8[%c0_24, %c0_25] : memref<288x128xf32, #tpu.memory_space<vmem>>, vector<288x128xf32>
    %c2_26 = arith.constant 2 : index
    %c0_27 = arith.constant 0 : index
    %c0_28 = arith.constant 0 : index
    %21 = vector.load %arg2[%c2_26, %c0_27, %c0_28] : memref<9x4x128xf32, #tpu.memory_space<vmem>>, vector<1x4x128xf32>
    %22 = vector.shape_cast %21 : vector<1x4x128xf32> to vector<4x128xf32>
    %cst_29 = arith.constant dense<0.000000e+00> : vector<288x128xf32>
    %23 = tpu.matmul %19, %22, %cst_29 {dimension_numbers = #tpu.dot_dimension_numbers<[1], [0], [0], [1], [0, 0, 1, 1], [], []>} : vector<288x4xf32>, vector<4x128xf32>, vector<288x128xf32> -> vector<288x128xf32>
    %24 = arith.addf %20, %23 : vector<288x128xf32>
    %c0_30 = arith.constant 0 : index
    %c0_31 = arith.constant 0 : index
    %25 = vector.load %arg8[%c0_30, %c0_31] : memref<288x128xf32, #tpu.memory_space<vmem>>, vector<288x128xf32>
    tpu.vector_store %arg8[%c0_30, %c0_31], %24 {strides = array<i32>} : memref<288x128xf32, #tpu.memory_space<vmem>>, vector<288x128xf32>,
    %c0_32 = arith.constant 0 : index
    %c18 = arith.constant 18 : index
    %c0_33 = arith.constant 0 : index
    %26 = vector.load %arg1[%c0_32, %c18, %c0_33] : memref<1x328x4xf32, #tpu.memory_space<vmem>>, vector<1x288x4xf32>
    %27 = vector.shape_cast %26 : vector<1x288x4xf32> to vector<288x4xf32>
    %c0_34 = arith.constant 0 : index
    %c0_35 = arith.constant 0 : index
    %28 = vector.load %arg8[%c0_34, %c0_35] : memref<288x128xf32, #tpu.memory_space<vmem>>, vector<288x128xf32>
    %c3 = arith.constant 3 : index
    %c0_36 = arith.constant 0 : index
    %c0_37 = arith.constant 0 : index
    %29 = vector.load %arg2[%c3, %c0_36, %c0_37] : memref<9x4x128xf32, #tpu.memory_space<vmem>>, vector<1x4x128xf32>
    %30 = vector.shape_cast %29 : vector<1x4x128xf32> to vector<4x128xf32>
    %cst_38 = arith.constant dense<0.000000e+00> : vector<288x128xf32>
    %31 = tpu.matmul %27, %30, %cst_38 {dimension_numbers = #tpu.dot_dimension_numbers<[1], [0], [0], [1], [0, 0, 1, 1], [], []>} : vector<288x4xf32>, vector<4x128xf32>, vector<288x128xf32> -> vector<288x128xf32>
    %32 = arith.addf %28, %31 : vector<288x128xf32>
    %c0_39 = arith.constant 0 : index
    %c0_40 = arith.constant 0 : index
    %33 = vector.load %arg8[%c0_39, %c0_40] : memref<288x128xf32, #tpu.memory_space<vmem>>, vector<288x128xf32>
    tpu.vector_store %arg8[%c0_39, %c0_40], %32 {strides = array<i32>} : memref<288x128xf32, #tpu.memory_space<vmem>>, vector<288x128xf32>,
    %c0_41 = arith.constant 0 : index
    %c19 = arith.constant 19 : index
    %c0_42 = arith.constant 0 : index
    %34 = vector.load %arg1[%c0_41, %c19, %c0_42] : memref<1x328x4xf32, #tpu.memory_space<vmem>>, vector<1x288x4xf32>
    %35 = vector.shape_cast %34 : vector<1x288x4xf32> to vector<288x4xf32>
    %c0_43 = arith.constant 0 : index
    %c0_44 = arith.constant 0 : index
    %36 = vector.load %arg8[%c0_43, %c0_44] : memref<288x128xf32, #tpu.memory_space<vmem>>, vector<288x128xf32>
    %c4 = arith.constant 4 : index
    %c0_45 = arith.constant 0 : index
    %c0_46 = arith.constant 0 : index
    %37 = vector.load %arg2[%c4, %c0_45, %c0_46] : memref<9x4x128xf32, #tpu.memory_space<vmem>>, vector<1x4x128xf32>
    %38 = vector.shape_cast %37 : vector<1x4x128xf32> to vector<4x128xf32>
    %cst_47 = arith.constant dense<0.000000e+00> : vector<288x128xf32>
    %39 = tpu.matmul %35, %38, %cst_47 {dimension_numbers = #tpu.dot_dimension_numbers<[1], [0], [0], [1], [0, 0, 1, 1], [], []>} : vector<288x4xf32>, vector<4x128xf32>, vector<288x128xf32> -> vector<288x128xf32>
    %40 = arith.addf %36, %39 : vector<288x128xf32>
    %c0_48 = arith.constant 0 : index
    %c0_49 = arith.constant 0 : index
    %41 = vector.load %arg8[%c0_48, %c0_49] : memref<288x128xf32, #tpu.memory_space<vmem>>, vector<288x128xf32>
    tpu.vector_store %arg8[%c0_48, %c0_49], %40 {strides = array<i32>} : memref<288x128xf32, #tpu.memory_space<vmem>>, vector<288x128xf32>,
    %c0_50 = arith.constant 0 : index
    %c20 = arith.constant 20 : index
    %c0_51 = arith.constant 0 : index
    %42 = vector.load %arg1[%c0_50, %c20, %c0_51] : memref<1x328x4xf32, #tpu.memory_space<vmem>>, vector<1x288x4xf32>
    %43 = vector.shape_cast %42 : vector<1x288x4xf32> to vector<288x4xf32>
    %c0_52 = arith.constant 0 : index
    %c0_53 = arith.constant 0 : index
    %44 = vector.load %arg8[%c0_52, %c0_53] : memref<288x128xf32, #tpu.memory_space<vmem>>, vector<288x128xf32>
    %c5 = arith.constant 5 : index
    %c0_54 = arith.constant 0 : index
    %c0_55 = arith.constant 0 : index
    %45 = vector.load %arg2[%c5, %c0_54, %c0_55] : memref<9x4x128xf32, #tpu.memory_space<vmem>>, vector<1x4x128xf32>
    %46 = vector.shape_cast %45 : vector<1x4x128xf32> to vector<4x128xf32>
    %cst_56 = arith.constant dense<0.000000e+00> : vector<288x128xf32>
    %47 = tpu.matmul %43, %46, %cst_56 {dimension_numbers = #tpu.dot_dimension_numbers<[1], [0], [0], [1], [0, 0, 1, 1], [], []>} : vector<288x4xf32>, vector<4x128xf32>, vector<288x128xf32> -> vector<288x128xf32>
    %48 = arith.addf %44, %47 : vector<288x128xf32>
    %c0_57 = arith.constant 0 : index
    %c0_58 = arith.constant 0 : index
    %49 = vector.load %arg8[%c0_57, %c0_58] : memref<288x128xf32, #tpu.memory_space<vmem>>, vector<288x128xf32>
    tpu.vector_store %arg8[%c0_57, %c0_58], %48 {strides = array<i32>} : memref<288x128xf32, #tpu.memory_space<vmem>>, vector<288x128xf32>,
    %c0_59 = arith.constant 0 : index
    %c36 = arith.constant 36 : index
    %c0_60 = arith.constant 0 : index
    %50 = vector.load %arg1[%c0_59, %c36, %c0_60] : memref<1x328x4xf32, #tpu.memory_space<vmem>>, vector<1x288x4xf32>
    %51 = vector.shape_cast %50 : vector<1x288x4xf32> to vector<288x4xf32>
    %c0_61 = arith.constant 0 : index
    %c0_62 = arith.constant 0 : index
    %52 = vector.load %arg8[%c0_61, %c0_62] : memref<288x128xf32, #tpu.memory_space<vmem>>, vector<288x128xf32>
    %c6 = arith.constant 6 : index
    %c0_63 = arith.constant 0 : index
    %c0_64 = arith.constant 0 : index
    %53 = vector.load %arg2[%c6, %c0_63, %c0_64] : memref<9x4x128xf32, #tpu.memory_space<vmem>>, vector<1x4x128xf32>
    %54 = vector.shape_cast %53 : vector<1x4x128xf32> to vector<4x128xf32>
    %cst_65 = arith.constant dense<0.000000e+00> : vector<288x128xf32>
    %55 = tpu.matmul %51, %54, %cst_65 {dimension_numbers = #tpu.dot_dimension_numbers<[1], [0], [0], [1], [0, 0, 1, 1], [], []>} : vector<288x4xf32>, vector<4x128xf32>, vector<288x128xf32> -> vector<288x128xf32>
    %56 = arith.addf %52, %55 : vector<288x128xf32>
    %c0_66 = arith.constant 0 : index
    %c0_67 = arith.constant 0 : index
    %57 = vector.load %arg8[%c0_66, %c0_67] : memref<288x128xf32, #tpu.memory_space<vmem>>, vector<288x128xf32>
    tpu.vector_store %arg8[%c0_66, %c0_67], %56 {strides = array<i32>} : memref<288x128xf32, #tpu.memory_space<vmem>>, vector<288x128xf32>,
    %c0_68 = arith.constant 0 : index
    %c37 = arith.constant 37 : index
    %c0_69 = arith.constant 0 : index
    %58 = vector.load %arg1[%c0_68, %c37, %c0_69] : memref<1x328x4xf32, #tpu.memory_space<vmem>>, vector<1x288x4xf32>
    %59 = vector.shape_cast %58 : vector<1x288x4xf32> to vector<288x4xf32>
    %c0_70 = arith.constant 0 : index
    %c0_71 = arith.constant 0 : index
    %60 = vector.load %arg8[%c0_70, %c0_71] : memref<288x128xf32, #tpu.memory_space<vmem>>, vector<288x128xf32>
    %c7 = arith.constant 7 : index
    %c0_72 = arith.constant 0 : index
    %c0_73 = arith.constant 0 : index
    %61 = vector.load %arg2[%c7, %c0_72, %c0_73] : memref<9x4x128xf32, #tpu.memory_space<vmem>>, vector<1x4x128xf32>
    %62 = vector.shape_cast %61 : vector<1x4x128xf32> to vector<4x128xf32>
    %cst_74 = arith.constant dense<0.000000e+00> : vector<288x128xf32>
    %63 = tpu.matmul %59, %62, %cst_74 {dimension_numbers = #tpu.dot_dimension_numbers<[1], [0], [0], [1], [0, 0, 1, 1], [], []>} : vector<288x4xf32>, vector<4x128xf32>, vector<288x128xf32> -> vector<288x128xf32>
    %64 = arith.addf %60, %63 : vector<288x128xf32>
    %c0_75 = arith.constant 0 : index
    %c0_76 = arith.constant 0 : index
    %65 = vector.load %arg8[%c0_75, %c0_76] : memref<288x128xf32, #tpu.memory_space<vmem>>, vector<288x128xf32>
    tpu.vector_store %arg8[%c0_75, %c0_76], %64 {strides = array<i32>} : memref<288x128xf32, #tpu.memory_space<vmem>>, vector<288x128xf32>,
    %c0_77 = arith.constant 0 : index
    %c38 = arith.constant 38 : index
    %c0_78 = arith.constant 0 : index
    %66 = vector.load %arg1[%c0_77, %c38, %c0_78] : memref<1x328x4xf32, #tpu.memory_space<vmem>>, vector<1x288x4xf32>
    %67 = vector.shape_cast %66 : vector<1x288x4xf32> to vector<288x4xf32>
    %c0_79 = arith.constant 0 : index
    %c0_80 = arith.constant 0 : index
    %68 = vector.load %arg8[%c0_79, %c0_80] : memref<288x128xf32, #tpu.memory_space<vmem>>, vector<288x128xf32>
    %c8 = arith.constant 8 : index
    %c0_81 = arith.constant 0 : index
    %c0_82 = arith.constant 0 : index
    %69 = vector.load %arg2[%c8, %c0_81, %c0_82] : memref<9x4x128xf32, #tpu.memory_space<vmem>>, vector<1x4x128xf32>
    %70 = vector.shape_cast %69 : vector<1x4x128xf32> to vector<4x128xf32>
    %cst_83 = arith.constant dense<0.000000e+00> : vector<288x128xf32>
    %71 = tpu.matmul %67, %70, %cst_83 {dimension_numbers = #tpu.dot_dimension_numbers<[1], [0], [0], [1], [0, 0, 1, 1], [], []>} : vector<288x4xf32>, vector<4x128xf32>, vector<288x128xf32> -> vector<288x128xf32>
    %72 = arith.addf %68, %71 : vector<288x128xf32>
    %c0_84 = arith.constant 0 : index
    %c0_85 = arith.constant 0 : index
    %73 = vector.load %arg8[%c0_84, %c0_85] : memref<288x128xf32, #tpu.memory_space<vmem>>, vector<288x128xf32>
    tpu.vector_store %arg8[%c0_84, %c0_85], %72 {strides = array<i32>} : memref<288x128xf32, #tpu.memory_space<vmem>>, vector<288x128xf32>,
    %c0_86 = arith.constant 0 : index
    %c0_87 = arith.constant 0 : index
    %74 = vector.load %arg8[%c0_86, %c0_87] : memref<288x128xf32, #tpu.memory_space<vmem>>, vector<288x128xf32>
    %c0_88 = arith.constant 0 : index
    %c0_89 = arith.constant 0 : index
    %75 = vector.load %arg3[%c0_88, %c0_89] : memref<1x128xf32, #tpu.memory_space<vmem>>, vector<1x128xf32>
    %76 = vector.broadcast %75 : vector<1x128xf32> to vector<288x128xf32>
    %77 = arith.addf %74, %76 : vector<288x128xf32>
    %cst_90 = arith.constant 0.000000e+00 : f32
    %78 = vector.broadcast %cst_90 : f32 to vector<288x128xf32>
    %79 = arith.maximumf %77, %78 : vector<288x128xf32>
    %c0_91 = arith.constant 0 : index
    %c0_92 = arith.constant 0 : index
    %80 = vector.load %arg6[%c0_91, %c0_92] : memref<1x288xf32, #tpu.memory_space<vmem>>, vector<1x288xf32>
    %cst_93 = arith.constant dense<0.000000e+00> : vector<1x128xf32>
    %81 = tpu.matmul %80, %79, %cst_93 {dimension_numbers = #tpu.dot_dimension_numbers<[1], [0], [0], [1], [0, 0, 1, 1], [], []>} : vector<1x288xf32>, vector<288x128xf32>, vector<1x128xf32> -> vector<1x128xf32>
    %c0_94 = arith.constant 0 : index
    %c0_95 = arith.constant 0 : index
    %82 = vector.load %arg9[%c0_94, %c0_95] : memref<1x128xf32, #tpu.memory_space<vmem>>, vector<1x128xf32>
    tpu.vector_store %arg9[%c0_94, %c0_95], %81 {strides = array<i32>} : memref<1x128xf32, #tpu.memory_space<vmem>>, vector<1x128xf32>,
    %c0_96 = arith.constant 0 : index
    %c0_97 = arith.constant 0 : index
    %83 = vector.load %arg9[%c0_96, %c0_97] : memref<1x128xf32, #tpu.memory_space<vmem>>, vector<1x128xf32>
    %c0_98 = arith.constant 0 : index
    %c0_99 = arith.constant 0 : index
    %84 = vector.load %arg4[%c0_98, %c0_99] : memref<128x128xf32, #tpu.memory_space<vmem>>, vector<128x128xf32>
    %cst_100 = arith.constant dense<0.000000e+00> : vector<1x128xf32>
    %85 = tpu.matmul %83, %84, %cst_100 {dimension_numbers = #tpu.dot_dimension_numbers<[1], [0], [0], [1], [0, 0, 1, 1], [], []>} : vector<1x128xf32>, vector<128x128xf32>, vector<1x128xf32> -> vector<1x128xf32>
    %c0_101 = arith.constant 0 : index
    %c0_102 = arith.constant 0 : index
    %86 = vector.load %arg5[%c0_101, %c0_102] : memref<1x128xf32, #tpu.memory_space<vmem>>, vector<1x128xf32>
    %87 = arith.addf %85, %86 : vector<1x128xf32>
    %88 = vector.shape_cast %87 : vector<1x128xf32> to vector<1x1x128xf32>
    %c0_103 = arith.constant 0 : index
    %c0_104 = arith.constant 0 : index
    %c0_105 = arith.constant 0 : index
    %89 = vector.load %arg7[%c0_103, %c0_104, %c0_105] : memref<1x1x128xf32, #tpu.memory_space<vmem>>, vector<1x1x128xf32>
    tpu.vector_store %arg7[%c0_103, %c0_104, %c0_105], %88 {strides = array<i32>} : memref<1x1x128xf32, #tpu.memory_space<vmem>>, vector<1x1x128xf32>,
    return
  }
  func.func @transform_0(%arg0: i32) -> (i32, i32, i32) {
    %c0_i32 = arith.constant 0 : i32
    %c0_i32_0 = arith.constant 0 : i32
    %c0_i32_1 = arith.constant 0 : i32
    return %arg0, %c0_i32, %c0_i32_0 : i32, i32, i32
  }
  func.func @transform_1(%arg0: i32) -> (i32, i32, i32) {
    %c0_i32 = arith.constant 0 : i32
    %c0_i32_0 = arith.constant 0 : i32
    %c0_i32_1 = arith.constant 0 : i32
    %c0_i32_2 = arith.constant 0 : i32
    return %c0_i32, %c0_i32_0, %c0_i32_1 : i32, i32, i32
  }
  func.func @transform_2(%arg0: i32) -> (i32, i32) {
    %c0_i32 = arith.constant 0 : i32
    %c0_i32_0 = arith.constant 0 : i32
    %c0_i32_1 = arith.constant 0 : i32
    return %c0_i32, %c0_i32_0 : i32, i32
  }
  func.func @transform_3(%arg0: i32) -> (i32, i32) {
    %c0_i32 = arith.constant 0 : i32
    %c0_i32_0 = arith.constant 0 : i32
    %c0_i32_1 = arith.constant 0 : i32
    return %c0_i32, %c0_i32_0 : i32, i32
  }
  func.func @transform_4(%arg0: i32) -> (i32, i32) {
    %c0_i32 = arith.constant 0 : i32
    %c0_i32_0 = arith.constant 0 : i32
    %c0_i32_1 = arith.constant 0 : i32
    return %c0_i32, %c0_i32_0 : i32, i32
  }
  func.func @transform_5(%arg0: i32) -> (i32, i32) {
    %c0_i32 = arith.constant 0 : i32
    %c0_i32_0 = arith.constant 0 : i32
    %c0_i32_1 = arith.constant 0 : i32
    return %c0_i32, %c0_i32_0 : i32, i32
  }
  func.func @transform_6(%arg0: i32) -> (i32, i32, i32) {
    %c0_i32 = arith.constant 0 : i32
    %c0_i32_0 = arith.constant 0 : i32
    %c0_i32_1 = arith.constant 0 : i32
    return %arg0, %c0_i32, %c0_i32_0 : i32, i32, i32
  }
}

</mosaic_0001>

<bundles_post_ra>
// kernel: _features_fn.1
= control target key start
LH: loop header
LB: loop body
LE: loop exit
PB: predicated region body
PF: predicated region fallthrough
CT: control target
= control target key end

     0   :  { %11 = vsyncpa [#allocation5], 0  ;;  %s5956_s0 = inlined_call_operand.vmem [shape: f32[2,328,4], index: 0, kind: input, shape index: {}]   ;;  %s5957_s1 = inlined_call_operand.vmem [shape: f32[9,4,128], index: 1, kind: input, shape index: {}]   ;;  %s5958_s2 = inlined_call_operand.vmem [shape: f32[1,128], index: 2, kind: input, shape index: {}]   ;;  %s5959_s3 = inlined_call_operand.vmem [shape: f32[128,128], index: 3, kind: input, shape index: {}]   ;;  %s5960_s4 = inlined_call_operand.vmem [shape: f32[1,128], index: 4, kind: input, shape index: {}]   ;;  %s5961_s5 = inlined_call_operand.vmem [shape: f32[1,288], index: 5, kind: input, shape index: {}]   ;;  %s5962_s6 = inlined_call_operand.hbm [shape: f32[2,1,128], index: 6, kind: output, shape index: {}]  }
   0x1   :  { %13 = vsyncpa [#allocation5 + $0x1], 0  ;;  %s4506_s21 = smov 0   ;;  %s4508_s22 = smov 0  }
   0x2   :  { %s4510_s23 = smov 0   ;;  %s4512_s24 = smov 0  }
   0x3 LB: > { %s4527_s25 = sadd.s32 4294967295, %s4469_s24   ;;  %s4014_s26 = sadd.s32 4294967294, %s4469_s24   ;;  %s4469_s24 = sphi %s4512_s24, %s6062_s24   ;;  %s4465_s23 = sphi %s4510_s23, %s6061_s23   ;;  %s4461_s22 = sphi %s4508_s22, %s6060_s22   ;;  %s4457_s21 = sphi %s4506_s21, %s6059_s21  }
   0x4   : > { %s4531_s27 = sadd.s32 1, %s4469_s24   ;;  %s157_s28 = sadd.s32 1, %s4465_s23 }
   0x5   : > { %s154_s29 = ssub.s32 %s4469_s24, %s4531_s27  ;;  %p167_p0 = scmp.ne.s32.totalorder %s4465_s23, %s4461_s22 }
   0x6   : > { %p155_p1 = scmp.eq.s32.totalorder %s154_s29, 0  ;;  %p168_p2 = scmp.eq.s32.totalorder %s4527_s25, 1 }
   0x7   : > { %p173_p3 = scmp.ne.s32.totalorder %s4461_s22, %s4457_s21  ;;  %p174_p4 = scmp.eq.s32.totalorder %s4014_s26, 1 }
   0x8   : > { %s4542_s30 = scalar_select %p155_p1, %s4465_s23, %s157_s28  }
   0x9   : > { %p4544_p5 = por %p168_p2, %p167_p0  ;;  %p4548_p6 = por %p174_p4, %p173_p3 }
   0xa   : > { %p4017_p7 = scmp.ge.s32.totalorder %s4469_s24, 1  ;;  %p215_p8 = scmp.lt.s32.totalorder %s4469_s24, 3 }
   0xc   : > { %p216_p9 = pnand %p4017_p7, %p215_p8 }
   0xe   : > { %219 = sbr.rel (%p216_p9) target bundleno = 1097 (0x449), region = 44 }
  0x13   : > { %v357_v0 = vld [vmem:[%s5957_s1] sm:$0xf]  ;;  %vm467_vm0 = vcmask 1043456   ;;  %p244_p10 = scmp.lt.s32.totalorder %s4527_s25, 1  ;;  %vm358_vm1 = vcmask 31744   ;;  %vm3843_vm2 = vcmask 261120  }
  0x14   : > { %4363 = vmatpush.msk.msra.mxu1 %vm467_vm0, %v357_v0  ;;  %4364 = vmatpush.msk.msra.mxu2 %vm467_vm0, %v357_v0  ;;  %v4056_v7 = vld [vmem:[%s5957_s1 + $0x4] sm:$0xf]  ;;  %v4094_v26 = vld [vmem:[%s5957_s1 + $0x8] sm:$0xf]  ;;  %v4132_v31 = vld [vmem:[%s5957_s1 + $0xc] sm:$0xf] }
  0x15   : > { %s245_s11 = scalar_select %p244_p10, %s4527_s25, 1  ;;  %4019 = vmatpush.msk.msra.mxu0 %vm467_vm0, %v357_v0  ;;  %4365 = vmatpush.msk.msra.mxu3 %vm467_vm0, %v357_v0  ;;  %v4170_v36 = vld [vmem:[%s5957_s1 + $0x10] sm:$0xf] }
  0x16   : > { %4057 = vmatpush.msk.msrb.mxu1 %vm467_vm0, %v4056_v7  ;;  %4095 = vmatpush.msk.msrb.mxu2 %vm467_vm0, %v4094_v26  ;;  %s242_s29 = sand.u32 1, %s4461_s22   ;;  %s4427_s26 = scalar_lea.hbm %s5962_s6, 2 }
  0x17   : > { %s4366_s12 = smul.u32 328, %s245_s11  ;;  %4133 = vmatpush.msk.msrb.mxu3 %vm467_vm0, %v4132_v31  ;;  %4171 = vmatpush.msk.msrb.mxu0 %vm467_vm0, %v4170_v36  ;;  %s3955_s11 = scalar_lea.hbm %s5962_s6, %s4527_s25 }
  0x18   : > { %s243_s14 = scalar_lea.vmem [#allocation4], %s242_s29  ;;  %s3959_s17 = sshll.u32 %s3955_s11, 4  ;;  %s3960_s17 = int_to_ptr.hbm [resolvable:$true] %s3959_s17 }
  0x19   : > { %s4566_s15 = scalar_lea.vmem %s5956_s0, %s4366_s12  ;;  %s3957_s16 = sshll.u32 %s243_s14, 4  ;;  %s3958_s16 = int_to_ptr.vmem [resolvable:$true] %s3957_s16 }
  0x1a   : > { %v296_v1 = vld [vmem:[%s4566_s15 + $0x58] sm:$0xff]  ;;  %v301_v2 = vld [vmem:[%s4566_s15 + $0x80] sm:$0xff]  ;;  %v311_v4 = vld [vmem:[%s4566_s15 + $0xd0] sm:$0xff]  ;;  %s3947_s18 = scalar_lea.sflag [#allocation5], %s242_s29  ;;  %s4421_s19 = sshra.s32 %s3960_s17, 4  ;;  %s4422_s19 = int_to_ptr.hbm [resolvable:$true] %s4421_s19 }
  0x1b   : > { %v285_v3 = vld [vmem:[%s4566_s15] sm:$0xff]  ;;  %4031 = vmatmul.msk.f32.vlgmr.msra.gmra.mxu1 %vm358_vm1, %v296_v1  ;;  %4036 = vmatmul.msk.f32.vlgmr.msra.gmra.mxu2 %vm358_vm1, %v301_v2  ;;  %v302_v6 = vld [vmem:[%s4566_s15 + $0x88] sm:$0xff]  ;;  %v312_v9 = vld [vmem:[%s4566_s15 + $0xd8] sm:$0xff]  ;;  %p4428_p0 = scmp.lt.s32.totalorder %s4422_s19, %s5962_s6 }
  0x1c   : > { %4020 = vmatmul.msk.f32.vlgmr.msra.gmra.mxu0 %vm358_vm1, %v285_v3  ;;  %4046 = vmatmul.msk.f32.vlgmr.msra.gmra.mxu3 %vm358_vm1, %v311_v4  ;;  %v297_v5 = vld [vmem:[%s4566_s15 + $0x60] sm:$0xff]  ;;  %v286_v8 = vld [vmem:[%s4566_s15 + $0x8] sm:$0xff]  ;;  %v303_v11 = vld [vmem:[%s4566_s15 + $0x90] sm:$0xff] }
  0x1d   : > { %v298_v10 = vld [vmem:[%s4566_s15 + $0x68] sm:$0xff]  ;;  %v287_v12 = vld [vmem:[%s4566_s15 + $0x10] sm:$0xff]  ;;  %v313_v13 = vld [vmem:[%s4566_s15 + $0xe0] sm:$0xff] }
  0x1e   : > { %v299_v14 = vld [vmem:[%s4566_s15 + $0x70] sm:$0xff]  ;;  %v304_v15 = vld [vmem:[%s4566_s15 + $0x98] sm:$0xff]  ;;  %v314_v17 = vld [vmem:[%s4566_s15 + $0xe8] sm:$0xff] }
  0x1f   : > { %v288_v16 = vld [vmem:[%s4566_s15 + $0x18] sm:$0xff]  ;;  %v305_v19 = vld [vmem:[%s4566_s15 + $0xa0] sm:$0xff]  ;;  %v315_v21 = vld [vmem:[%s4566_s15 + $0xf0] sm:$0xff] }
  0x20   : > { %v300_v18 = vld [vmem:[%s4566_s15 + $0x78] sm:$0xff]  ;;  %v289_v20 = vld [vmem:[%s4566_s15 + $0x20] sm:$0xff]  ;;  %v306_v22 = vld [vmem:[%s4566_s15 + $0xa8] sm:$0xff] }
  0x21   : > { %v668_v23 = vld [vmem:[%s4566_s15 + $0x1] sm:$0xff]  ;;  %v316_v25 = vld [vmem:[%s4566_s15 + $0xf8] sm:$0xff]  ;;  %v307_v27 = vld [vmem:[%s4566_s15 + $0xb0] sm:$0xff] }
  0x22   : > { %v290_v24 = vld [vmem:[%s4566_s15 + $0x28] sm:$0xff]  ;;  %v291_v29 = vld [vmem:[%s4566_s15 + $0x30] sm:$0xff]  ;;  %v317_v30 = vld [vmem:[%s4566_s15 + $0x100] sm:$0xff] }
  0x23   : > { %4032 = vmatmul.msk.f32.gmra.mxu1 %vm358_vm1, %v297_v5  ;;  %4037 = vmatmul.msk.f32.gmra.mxu2 %vm358_vm1, %v302_v6  ;;  %v669_v28 = vld [vmem:[%s4566_s15 + $0x9] sm:$0xff]  ;;  %v308_v32 = vld [vmem:[%s4566_s15 + $0xb8] sm:$0xff]  ;;  %v309_v37 = vld [vmem:[%s4566_s15 + $0xc0] sm:$0xff] }
  0x24   : > { %4021 = vmatmul.msk.f32.gmra.mxu0 %vm358_vm1, %v286_v8  ;;  %4047 = vmatmul.msk.f32.gmra.mxu3 %vm358_vm1, %v312_v9  ;;  %v670_v33 = vld [vmem:[%s4566_s15 + $0x11] sm:$0xff]  ;;  %v318_v35 = vld [vmem:[%s4566_s15 + $0x108] sm:$0xff]  ;;  %v671_v38 = vld [vmem:[%s4566_s15 + $0x19] sm:$0xff] }
  0x25   : > { %v292_v34 = vld [vmem:[%s4566_s15 + $0x38] sm:$0xff]  ;;  %v293_v39 = vld [vmem:[%s4566_s15 + $0x40] sm:$0xff]  ;;  %v319_v40 = vld [vmem:[%s4566_s15 + $0x110] sm:$0xff] }
  0x26   : > { %v310_v41 = vld [vmem:[%s4566_s15 + $0xc8] sm:$0xff]  ;;  %v320_v44 = vld [vmem:[%s4566_s15 + $0x118] sm:$0xff]  ;;  %v295_v47 = vld [vmem:[%s4566_s15 + $0x50] sm:$0xff] }
  0x27   : > { %v672_v42 = vld [vmem:[%s4566_s15 + $0x21] sm:$0xff]  ;;  %v673_v45 = vld [vmem:[%s4566_s15 + $0x29] sm:$0xff]  ;;  %v1432_v48 = vld [vmem:[%s4566_s15 + $0x12] sm:$0xff] }
  0x28   : > { %v294_v43 = vld [vmem:[%s4566_s15 + $0x48] sm:$0xff]  ;;  %v674_v49 = vld [vmem:[%s4566_s15 + $0x31] sm:$0xff]  ;;  %v1433_v51 = vld [vmem:[%s4566_s15 + $0x1a] sm:$0xff] }
  0x29   : > { %v1050_v46 = vld [vmem:[%s4566_s15 + $0x2] sm:$0xff]  ;;  %v1051_v50 = vld [vmem:[%s4566_s15 + $0xa] sm:$0xff]  ;;  %v1814_v52 = vld [vmem:[%s4566_s15 + $0x13] sm:$0xff] }
  0x2a   : > { %v675_v53 = vld [vmem:[%s4566_s15 + $0x39] sm:$0xff]  ;;  %v1434_v54 = vld [vmem:[%s4566_s15 + $0x22] sm:$0xff]  ;;  %v1435_v57 = vld [vmem:[%s4566_s15 + $0x2a] sm:$0xff] }
  0x2b   : > { %4033 = vmatmul.msk.f32.gmra.mxu1 %vm358_vm1, %v298_v10  ;;  %4038 = vmatmul.msk.f32.gmra.mxu2 %vm358_vm1, %v303_v11  ;;  %v1815_v55 = vld [vmem:[%s4566_s15 + $0x1b] sm:$0xff]  ;;  %v1816_v58 = vld [vmem:[%s4566_s15 + $0x23] sm:$0xff]  ;;  %v1436_v60 = vld [vmem:[%s4566_s15 + $0x32] sm:$0xff] }
  0x2c   : > { %4022 = vmatmul.msk.f32.gmra.mxu0 %vm358_vm1, %v287_v12  ;;  %4048 = vmatmul.msk.f32.gmra.mxu3 %vm358_vm1, %v313_v13  ;;  %v676_v56 = vld [vmem:[%s4566_s15 + $0x41] sm:$0xff]  ;;  %v677_v59 = vld [vmem:[%s4566_s15 + $0x49] sm:$0xff]  ;;  %v678_v62 = vld [vmem:[%s4566_s15 + $0x51] sm:$0xff] }
  0x2d   : > { %v1817_v61 = vld [vmem:[%s4566_s15 + $0x2b] sm:$0xff]  ;;  %v1437_v63 = vld [vmem:[%s4566_s15 + $0x3a] sm:$0xff]  ;;  %v1438_v4 = vld [vmem:[%s4566_s15 + $0x42] sm:$0xff] }
  0x2e   : > { %v1818_v0 = vld [vmem:[%s4566_s15 + $0x33] sm:$0xff]  ;;  %v1819_v5 = vld [vmem:[%s4566_s15 + $0x3b] sm:$0xff]  ;;  %v1439_v11 = vld [vmem:[%s4566_s15 + $0x4a] sm:$0xff] }
  0x2f   : > { %v679_v2 = vld [vmem:[%s4566_s15 + $0x59] sm:$0xff]  ;;  %v680_v9 = vld [vmem:[%s4566_s15 + $0x61] sm:$0xff] }
  0x30   : > { %v1820_v12 = vld [vmem:[%s4566_s15 + $0x43] sm:$0xff]  ;;  %v1822_v26 = vld [vmem:[%s4566_s15 + $0x53] sm:$0xff] }
  0x33   : > { %4034 = vmatmul.msk.f32.gmra.mxu1 %vm358_vm1, %v299_v14  ;;  %4039 = vmatmul.msk.f32.gmra.mxu2 %vm358_vm1, %v304_v15 }
  0x34   : > { %4023 = vmatmul.msk.f32.gmra.mxu0 %vm358_vm1, %v288_v16  ;;  %4049 = vmatmul.msk.f32.gmra.mxu3 %vm358_vm1, %v314_v17  ;;  %v681_v16 = vld [vmem:[%s4566_s15 + $0x69] sm:$0xff] }
  0x3b   : > { %4035 = vmatmul.msk.f32.gmra.mxu1 %vm358_vm1, %v300_v18  ;;  %4040 = vmatmul.msk.f32.gmra.mxu2 %vm358_vm1, %v305_v19  ;;  %v1440_v18 = vld [vmem:[%s4566_s15 + $0x52] sm:$0xff] }
  0x3c   : > { %4024 = vmatmul.msk.f32.gmra.mxu0 %vm358_vm1, %v289_v20  ;;  %4050 = vmatmul.msk.f32.gmra.mxu3 %vm358_vm1, %v315_v21  ;;  %v1821_v19 = vld [vmem:[%s4566_s15 + $0x4b] sm:$0xff] }
  0x43   : > { %4041 = vmatmul.msk.f32.gmra.mxu2 %vm358_vm1, %v306_v22  ;;  %4058 = vmatmul.msk.f32.vlgmr.msrb.gmra.mxu1 %vm358_vm1, %v668_v23  ;;  %v682_v23 = vld [vmem:[%s4566_s15 + $0x71] sm:$0xff] }
  0x44   : > { %4025 = vmatmul.msk.f32.gmra.mxu0 %vm358_vm1, %v290_v24  ;;  %4051 = vmatmul.msk.f32.gmra.mxu3 %vm358_vm1, %v316_v25  ;;  %v1441_v25 = vld [vmem:[%s4566_s15 + $0x5a] sm:$0xff] }
  0x4b   : > { %4042 = vmatmul.msk.f32.gmra.mxu2 %vm358_vm1, %v307_v27  ;;  %4059 = vmatmul.msk.f32.gmra.mxu1 %vm358_vm1, %v669_v28 }
  0x4c   : > { %4026 = vmatmul.msk.f32.gmra.mxu0 %vm358_vm1, %v291_v29  ;;  %4052 = vmatmul.msk.f32.gmra.mxu3 %vm358_vm1, %v317_v30  ;;  %v683_v30 = vld [vmem:[%s4566_s15 + $0x79] sm:$0xff] }
  0x53   : > { %4043 = vmatmul.msk.f32.gmra.mxu2 %vm358_vm1, %v308_v32  ;;  %4060 = vmatmul.msk.f32.gmra.mxu1 %vm358_vm1, %v670_v33  ;;  %v1442_v32 = vld [vmem:[%s4566_s15 + $0x62] sm:$0xff] }
  0x54   : > { %4027 = vmatmul.msk.f32.gmra.mxu0 %vm358_vm1, %v292_v34  ;;  %4053 = vmatmul.msk.f32.gmra.mxu3 %vm358_vm1, %v318_v35  ;;  %v1823_v33 = vld [vmem:[%s4566_s15 + $0x5b] sm:$0xff] }
  0x5b   : > { %4044 = vmatmul.msk.f32.gmra.mxu2 %vm358_vm1, %v309_v37  ;;  %4061 = vmatmul.msk.f32.gmra.mxu1 %vm358_vm1, %v671_v38  ;;  %v684_v37 = vld [vmem:[%s4566_s15 + $0x81] sm:$0xff] }
  0x5c   : > { %4028 = vmatmul.msk.f32.gmra.mxu0 %vm358_vm1, %v293_v39  ;;  %4054 = vmatmul.msk.f32.gmra.mxu3 %vm358_vm1, %v319_v40  ;;  %v1443_v39 = vld [vmem:[%s4566_s15 + $0x6a] sm:$0xff] }
  0x5d   : > { %v1824_v40 = vld [vmem:[%s4566_s15 + $0x63] sm:$0xff] }
  0x63   : > { %4045 = vmatmul.msk.f32.gmra.mxu2 %vm358_vm1, %v310_v41  ;;  %4062 = vmatmul.msk.f32.gmra.mxu1 %vm358_vm1, %v672_v42 }
  0x64   : > { %4029 = vmatmul.msk.f32.gmra.mxu0 %vm358_vm1, %v294_v43  ;;  %4055 = vmatmul.msk.f32.gmra.mxu3 %vm358_vm1, %v320_v44  ;;  %v685_v44 = vld [vmem:[%s4566_s15 + $0x89] sm:$0xff] }
  0x6b   : > { %4063 = vmatmul.msk.f32.gmra.mxu1 %vm358_vm1, %v673_v45  ;;  %4096 = vmatmul.msk.f32.vlgmr.msrb.gmra.mxu2 %vm358_vm1, %v1050_v46  ;;  %v1444_v46 = vld [vmem:[%s4566_s15 + $0x72] sm:$0xff] }
  0x6c   : > { %4030 = vmatmul.msk.f32.gmra.mxu0 %vm358_vm1, %v295_v47  ;;  %4134 = vmatmul.msk.f32.vlgmr.msrb.gmra.mxu3 %vm358_vm1, %v1432_v48  ;;  %v1825_v47 = vld [vmem:[%s4566_s15 + $0x6b] sm:$0xff] }
  0x73   : > { %4064 = vmatmul.msk.f32.gmra.mxu1 %vm358_vm1, %v674_v49  ;;  %4097 = vmatmul.msk.f32.gmra.mxu2 %vm358_vm1, %v1051_v50 }
  0x74   : > { %4135 = vmatmul.msk.f32.gmra.mxu3 %vm358_vm1, %v1433_v51  ;;  %4172 = vmatmul.msk.f32.vlgmr.msrb.gmra.mxu0 %vm358_vm1, %v1814_v52 }
  0x7b   : > { %4065 = vmatmul.msk.f32.gmra.mxu1 %vm358_vm1, %v675_v53  ;;  %4098 = vmatmul.msk.f32.gmra.mxu2 %vm358_vm1, %v1432_v48  ;;  %v1445_v53 = vld [vmem:[%s4566_s15 + $0x7a] sm:$0xff] }
  0x7c   : > { %4136 = vmatmul.msk.f32.gmra.mxu3 %vm358_vm1, %v1434_v54  ;;  %4173 = vmatmul.msk.f32.gmra.mxu0 %vm358_vm1, %v1815_v55 }
  0x83   : > { %4066 = vmatmul.msk.f32.gmra.mxu1 %vm358_vm1, %v676_v56  ;;  %4099 = vmatmul.msk.f32.gmra.mxu2 %vm358_vm1, %v1433_v51  ;;  %v686_v51 = vld [vmem:[%s4566_s15 + $0x91] sm:$0xff] }
  0x84   : > { %4137 = vmatmul.msk.f32.gmra.mxu3 %vm358_vm1, %v1435_v57  ;;  %4174 = vmatmul.msk.f32.gmra.mxu0 %vm358_vm1, %v1816_v58  ;;  %v687_v58 = vld [vmem:[%s4566_s15 + $0x99] sm:$0xff] }
  0x8b   : > { %4067 = vmatmul.msk.f32.gmra.mxu1 %vm358_vm1, %v677_v59  ;;  %4100 = vmatmul.msk.f32.gmra.mxu2 %vm358_vm1, %v1434_v54  ;;  %v1826_v54 = vld [vmem:[%s4566_s15 + $0x73] sm:$0xff] }
  0x8c   : > { %4138 = vmatmul.msk.f32.gmra.mxu3 %vm358_vm1, %v1436_v60  ;;  %4175 = vmatmul.msk.f32.gmra.mxu0 %vm358_vm1, %v1817_v61  ;;  %v1827_v61 = vld [vmem:[%s4566_s15 + $0x7b] sm:$0xff] }
  0x93   : > { %4068 = vmatmul.msk.f32.gmra.mxu1 %vm358_vm1, %v678_v62  ;;  %4101 = vmatmul.msk.f32.gmra.mxu2 %vm358_vm1, %v1435_v57 }
  0x94   : > { %4139 = vmatmul.msk.f32.gmra.mxu3 %vm358_vm1, %v1437_v63  ;;  %4176 = vmatmul.msk.f32.gmra.mxu0 %vm358_vm1, %v1818_v0 }
  0x98   : > { %v4708_v1 = vpop.f32.mrf.mxu1 }
  0x99   : > { %v4711_v3 = vpop.f32.mrf.mxu0 }
  0x9b   : > { %4069 = vmatmul.msk.f32.gmra.mxu1 %vm358_vm1, %v679_v2  ;;  %4102 = vmatmul.msk.f32.gmra.mxu2 %vm358_vm1, %v1436_v60  ;;  %v1446_v60 = vld [vmem:[%s4566_s15 + $0x82] sm:$0xff] }
  0x9c   : > { %4140 = vmatmul.msk.f32.gmra.mxu3 %vm358_vm1, %v1438_v4  ;;  %4177 = vmatmul.msk.f32.gmra.mxu0 %vm358_vm1, %v1819_v5  ;;  %v688_v2 = vld [vmem:[%s4566_s15 + $0xa1] sm:$0xff]  ;;  %v1447_v5 = vld [vmem:[%s4566_s15 + $0x8a] sm:$0xff] }
  0x9e   : > { %v4719_v6 = vpop.f32.mrf.mxu2 }
  0x9f   : > { %v4721_v7 = vpop.f32.mrf.mxu3 }
  0xa0   : > { %v4723_v8 = vpop.f32.mrf.mxu1 }
  0xa1   : > { %v4726_v10 = vpop.f32.mrf.mxu0 }
  0xa3   : > { %4070 = vmatmul.msk.f32.gmra.mxu1 %vm358_vm1, %v680_v9  ;;  %4103 = vmatmul.msk.f32.gmra.mxu2 %vm358_vm1, %v1437_v63  ;;  %v1828_v9 = vld [vmem:[%s4566_s15 + $0x83] sm:$0xff] }
  0xa4   : > { %4141 = vmatmul.msk.f32.gmra.mxu3 %vm358_vm1, %v1439_v11  ;;  %4178 = vmatmul.msk.f32.gmra.mxu0 %vm358_vm1, %v1820_v12 }
  0xa6   : > { %v4734_v13 = vpop.f32.mrf.mxu2 }
  0xa7   : > { %v4736_v14 = vpop.f32.mrf.mxu3 }
  0xa8   : > { %v4738_v15 = vpop.f32.mrf.mxu1 }
  0xa9   : > { %v4741_v17 = vpop.f32.mrf.mxu0 }
  0xab   : > { %4071 = vmatmul.msk.f32.gmra.mxu1 %vm358_vm1, %v681_v16  ;;  %4104 = vmatmul.msk.f32.gmra.mxu2 %vm358_vm1, %v1438_v4 }
  0xac   : > { %4142 = vmatmul.msk.f32.gmra.mxu3 %vm358_vm1, %v1440_v18  ;;  %4179 = vmatmul.msk.f32.gmra.mxu0 %vm358_vm1, %v1821_v19 }
  0xae   : > { %v4749_v20 = vpop.f32.mrf.mxu2 }
  0xaf   : > { %v4751_v21 = vpop.f32.mrf.mxu3 }
  0xb0   : > { %v4753_v22 = vpop.f32.mrf.mxu1 }
  0xb1   : > { %v4756_v24 = vpop.f32.mrf.mxu0 }
  0xb3   : > { %4072 = vmatmul.msk.f32.gmra.mxu1 %vm358_vm1, %v682_v23  ;;  %4105 = vmatmul.msk.f32.gmra.mxu2 %vm358_vm1, %v1439_v11  ;;  %v1448_v23 = vld [vmem:[%s4566_s15 + $0x92] sm:$0xff] }
  0xb4   : > { %4143 = vmatmul.msk.f32.gmra.mxu3 %vm358_vm1, %v1441_v25  ;;  %4180 = vmatmul.msk.f32.gmra.mxu0 %vm358_vm1, %v1822_v26 }
  0xb6   : > { %v4764_v27 = vpop.f32.mrf.mxu2 }
  0xb7   : > { %v4766_v28 = vpop.f32.mrf.mxu3 }
  0xb8   : > { %v4768_v29 = vpop.f32.mrf.mxu1 }
  0xb9   : > { %v4771_v31 = vpop.f32.mrf.mxu0 }
  0xbb   : > { %4073 = vmatmul.msk.f32.gmra.mxu1 %vm358_vm1, %v683_v30  ;;  %4106 = vmatmul.msk.f32.gmra.mxu2 %vm358_vm1, %v1440_v18  ;;  %v689_v18 = vld [vmem:[%s4566_s15 + $0xa9] sm:$0xff] }
  0xbc   : > { %4144 = vmatmul.msk.f32.gmra.mxu3 %vm358_vm1, %v1442_v32  ;;  %4181 = vmatmul.msk.f32.gmra.mxu0 %vm358_vm1, %v1823_v33 }
  0xbe   : > { %v4779_v34 = vpop.f32.mrf.mxu2 }
  0xbf   : > { %v4781_v35 = vpop.f32.mrf.mxu3 }
  0xc0   : > { %v4783_v36 = vpop.f32.mrf.mxu1 }
  0xc1   : > { %v4786_v38 = vpop.f32.mrf.mxu0  ;;  %v978_v26 = vadd.f32 %v4783_v36, %v4711_v3 }
  0xc3   : > { %4074 = vmatmul.msk.f32.gmra.mxu1 %vm358_vm1, %v684_v37  ;;  %4107 = vmatmul.msk.f32.gmra.mxu2 %vm358_vm1, %v1441_v25  ;;  %v1829_v25 = vld [vmem:[%s4566_s15 + $0x8b] sm:$0xff] }
  0xc4   : > { %4145 = vmatmul.msk.f32.gmra.mxu3 %vm358_vm1, %v1443_v39  ;;  %4182 = vmatmul.msk.f32.gmra.mxu0 %vm358_vm1, %v1824_v40 }
  0xc6   : > { %v4794_v41 = vpop.f32.mrf.mxu2 }
  0xc7   : > { %v4796_v42 = vpop.f32.mrf.mxu3 }
  0xc8   : > { %v4798_v43 = vpop.f32.mrf.mxu1 }
  0xc9   : > { %v4801_v45 = vpop.f32.mrf.mxu0  ;;  %v979_v3 = vadd.f32 %v4798_v43, %v4726_v10 }
  0xcb   : > { %4075 = vmatmul.msk.f32.gmra.mxu1 %vm358_vm1, %v685_v44  ;;  %4108 = vmatmul.msk.f32.gmra.mxu2 %vm358_vm1, %v1442_v32 }
  0xcc   : > { %4146 = vmatmul.msk.f32.gmra.mxu3 %vm358_vm1, %v1444_v46  ;;  %4183 = vmatmul.msk.f32.gmra.mxu0 %vm358_vm1, %v1825_v47  ;;  %v1830_v47 = vld [vmem:[%s4566_s15 + $0x93] sm:$0xff] }
  0xce   : > { %v4809_v48 = vpop.f32.mrf.mxu2 }
  0xcf   : > { %v4811_v49 = vpop.f32.mrf.mxu3 }
  0xd0   : > { %v4813_v50 = vpop.f32.mrf.mxu1 }
  0xd1   : > { %v4816_v52 = vpop.f32.mrf.mxu0  ;;  %v980_v10 = vadd.f32 %v4813_v50, %v4741_v17 }
  0xd3   : > { %4076 = vmatmul.msk.f32.gmra.mxu1 %vm358_vm1, %v686_v51  ;;  %4109 = vmatmul.msk.f32.gmra.mxu2 %vm358_vm1, %v1443_v39  ;;  %v690_v39 = vld [vmem:[%s4566_s15 + $0xb1] sm:$0xff] }
  0xd4   : > { %4147 = vmatmul.msk.f32.gmra.mxu3 %vm358_vm1, %v1445_v53  ;;  %4184 = vmatmul.msk.f32.gmra.mxu0 %vm358_vm1, %v1826_v54 }
  0xd6   : > { %v4824_v55 = vpop.f32.mrf.mxu2 }
  0xd7   : > { %v4826_v56 = vpop.f32.mrf.mxu3 }
  0xd8   : > { %v4828_v57 = vpop.f32.mrf.mxu1 }
  0xd9   : > { %v4831_v59 = vpop.f32.mrf.mxu0  ;;  %v981_v17 = vadd.f32 %v4828_v57, %v4756_v24 }
  0xdb   : > { %4077 = vmatmul.msk.f32.gmra.mxu1 %vm358_vm1, %v687_v58  ;;  %4110 = vmatmul.msk.f32.gmra.mxu2 %vm358_vm1, %v1444_v46  ;;  %v1449_v46 = vld [vmem:[%s4566_s15 + $0x9a] sm:$0xff] }
  0xdc   : > { %4148 = vmatmul.msk.f32.gmra.mxu3 %vm358_vm1, %v1446_v60  ;;  %4185 = vmatmul.msk.f32.gmra.mxu0 %vm358_vm1, %v1827_v61  ;;  %v691_v58 = vld [vmem:[%s4566_s15 + $0xb9] sm:$0xff] }
  0xde   : > { %v4839_v62 = vpop.f32.mrf.mxu2 }
  0xdf   : > { %v4841_v63 = vpop.f32.mrf.mxu3 }
  0xe0   : > { %v4843_v0 = vpop.f32.mrf.mxu1 }
  0xe1   : > { %v4846_v4 = vpop.f32.mrf.mxu0  ;;  %v982_v24 = vadd.f32 %v4843_v0, %v4771_v31 }
  0xe3   : > { %4078 = vmatmul.msk.f32.gmra.mxu1 %vm358_vm1, %v688_v2  ;;  %4111 = vmatmul.msk.f32.gmra.mxu2 %vm358_vm1, %v1445_v53  ;;  %v1450_v2 = vld [vmem:[%s4566_s15 + $0xa2] sm:$0xff] }
  0xe4   : > { %4149 = vmatmul.msk.f32.gmra.mxu3 %vm358_vm1, %v1447_v5  ;;  %4186 = vmatmul.msk.f32.gmra.mxu0 %vm358_vm1, %v1828_v9 }
  0xe6   : > { %v4854_v11 = vpop.f32.mrf.mxu2 }
  0xe7   : > { %v4856_v12 = vpop.f32.mrf.mxu3 }
  0xe8   : > { %v4858_v16 = vpop.f32.mrf.mxu1 }
  0xe9   : > { %v4861_v19 = vpop.f32.mrf.mxu0  ;;  %v983_v31 = vadd.f32 %v4858_v16, %v4786_v38 }
  0xeb   : > { %4079 = vmatmul.msk.f32.gmra.mxu1 %vm358_vm1, %v689_v18  ;;  %4112 = vmatmul.msk.f32.gmra.mxu2 %vm358_vm1, %v1446_v60 }
  0xec   : > { %4150 = vmatmul.msk.f32.gmra.mxu3 %vm358_vm1, %v1448_v23  ;;  %4187 = vmatmul.msk.f32.gmra.mxu0 %vm358_vm1, %v1829_v25 }
  0xee   : > { %v1252_v30 = vpop.f32.mrf.mxu2 }
  0xef   : > { %v1360_v32 = vadd.f32 %v1252_v30, %v978_v26  ;;  %v1634_v33 = vpop.f32.mrf.mxu3  ;;  %v692_v26 = vld [vmem:[%s4566_s15 + $0xc1] sm:$0xff] }
  0xf0   : > { %v4871_v37 = vpop.f32.mrf.mxu1 }
  0xf1   : > { %v4874_v40 = vadd.f32 %v1634_v33, %v1360_v32  ;;  %v4876_v44 = vpop.f32.mrf.mxu0  ;;  %v1832_v33 = vld [vmem:[%s4566_s15 + $0xa3] sm:$0xff]  ;;  %v984_v38 = vadd.f32 %v4871_v37, %v4801_v45 }
  0xf3   : > { %4080 = vmatmul.msk.f32.gmra.mxu1 %vm358_vm1, %v690_v39  ;;  %4113 = vmatmul.msk.f32.gmra.mxu2 %vm358_vm1, %v1447_v5  ;;  %v1831_v5 = vld [vmem:[%s4566_s15 + $0x9b] sm:$0xff] }
  0xf4   : > { %4151 = vmatmul.msk.f32.gmra.mxu3 %vm358_vm1, %v1449_v46  ;;  %4188 = vmatmul.msk.f32.gmra.mxu0 %vm358_vm1, %v1830_v47 }
  0xf6   : > { %v1255_v36 = vpop.f32.mrf.mxu2 }
  0xf7   : > { %v1361_v51 = vadd.f32 %v1255_v36, %v979_v3  ;;  %v1637_v53 = vpop.f32.mrf.mxu3  ;;  %v693_v36 = vld [vmem:[%s4566_s15 + $0xc9] sm:$0xff] }
  0xf8   : > { %v4886_v54 = vpop.f32.mrf.mxu1 }
  0xf9   : > { %v4889_v60 = vadd.f32 %v1637_v53, %v1361_v51  ;;  %v4891_v61 = vpop.f32.mrf.mxu0  ;;  %v985_v45 = vadd.f32 %v4886_v54, %v4816_v52 }
  0xfb   : > { %4081 = vmatmul.msk.f32.gmra.mxu1 %vm358_vm1, %v691_v58  ;;  %4114 = vmatmul.msk.f32.gmra.mxu2 %vm358_vm1, %v1448_v23  ;;  %v1451_v23 = vld [vmem:[%s4566_s15 + $0xaa] sm:$0xff] }
  0xfc   : > { %4152 = vmatmul.msk.f32.gmra.mxu3 %vm358_vm1, %v1450_v2  ;;  %4189 = vmatmul.msk.f32.gmra.mxu0 %vm358_vm1, %v1831_v5  ;;  %v1833_v58 = vld [vmem:[%s4566_s15 + $0xab] sm:$0xff] }
  0xfe   : > { %v1258_v43 = vpop.f32.mrf.mxu2 }
  0xff   : > { %v1362_v9 = vadd.f32 %v1258_v43, %v980_v10  ;;  %v1640_v18 = vpop.f32.mrf.mxu3 }
 0x100   : > { %v4901_v25 = vpop.f32.mrf.mxu1 }
 0x101   : > { %v4904_v30 = vadd.f32 %v1640_v18, %v1362_v9  ;;  %v4906_v32 = vpop.f32.mrf.mxu0  ;;  %v694_v9 = vld [vmem:[%s4566_s15 + $0xd1] sm:$0xff]  ;;  %v986_v52 = vadd.f32 %v4901_v25, %v4831_v59 }
 0x103   : > { %4082 = vmatmul.msk.f32.gmra.mxu1 %vm358_vm1, %v692_v26  ;;  %4115 = vmatmul.msk.f32.gmra.mxu2 %vm358_vm1, %v1449_v46  ;;  %v1452_v46 = vld [vmem:[%s4566_s15 + $0xb2] sm:$0xff] }
 0x104   : > { %4153 = vmatmul.msk.f32.gmra.mxu3 %vm358_vm1, %v1451_v23  ;;  %4190 = vmatmul.msk.f32.gmra.mxu0 %vm358_vm1, %v1832_v33  ;;  %v1834_v33 = vld [vmem:[%s4566_s15 + $0xb3] sm:$0xff] }
 0x106   : > { %v1261_v50 = vpop.f32.mrf.mxu2 }
 0x107   : > { %v1363_v39 = vadd.f32 %v1261_v50, %v981_v17  ;;  %v1643_v47 = vpop.f32.mrf.mxu3 }
 0x108   : > { %v4916_v3 = vpop.f32.mrf.mxu1 }
 0x109   : > { %v4919_v51 = vadd.f32 %v1643_v47, %v1363_v39  ;;  %v4921_v53 = vpop.f32.mrf.mxu0  ;;  %v695_v47 = vld [vmem:[%s4566_s15 + $0xd9] sm:$0xff]  ;;  %v987_v59 = vadd.f32 %v4916_v3, %v4846_v4 }
 0x10b   : > { %4083 = vmatmul.msk.f32.gmra.mxu1 %vm358_vm1, %v693_v36  ;;  %4116 = vmatmul.msk.f32.gmra.mxu2 %vm358_vm1, %v1450_v2  ;;  %v1453_v2 = vld [vmem:[%s4566_s15 + $0xba] sm:$0xff] }
 0x10c   : > { %4154 = vmatmul.msk.f32.gmra.mxu3 %vm358_vm1, %v1452_v46  ;;  %4191 = vmatmul.msk.f32.gmra.mxu0 %vm358_vm1, %v1833_v58 }
 0x10e   : > { %v1264_v57 = vpop.f32.mrf.mxu2 }
 0x10f   : > { %v1364_v5 = vadd.f32 %v1264_v57, %v982_v24  ;;  %v1646_v10 = vpop.f32.mrf.mxu3  ;;  %v1835_v24 = vld [vmem:[%s4566_s15 + $0xbb] sm:$0xff] }
 0x110   : > { %v4931_v43 = vpop.f32.mrf.mxu1 }
 0x111   : > { %v4934_v18 = vadd.f32 %v1646_v10, %v1364_v5  ;;  %v4936_v26 = vpop.f32.mrf.mxu0  ;;  %v988_v4 = vadd.f32 %v4931_v43, %v4861_v19 }
 0x113   : > { %4084 = vmatmul.msk.f32.gmra.mxu1 %vm358_vm1, %v694_v9  ;;  %4117 = vmatmul.msk.f32.gmra.mxu2 %vm358_vm1, %v1451_v23  ;;  %v1454_v23 = vld [vmem:[%s4566_s15 + $0xc2] sm:$0xff] }
 0x114   : > { %4155 = vmatmul.msk.f32.gmra.mxu3 %vm358_vm1, %v1453_v2  ;;  %4192 = vmatmul.msk.f32.gmra.mxu0 %vm358_vm1, %v1834_v33  ;;  %v696_v9 = vld [vmem:[%s4566_s15 + $0xe1] sm:$0xff] }
 0x116   : > { %v1267_v0 = vpop.f32.mrf.mxu2 }
 0x117   : > { %v1365_v17 = vadd.f32 %v1267_v0, %v983_v31  ;;  %v1649_v50 = vpop.f32.mrf.mxu3  ;;  %v1836_v0 = vld [vmem:[%s4566_s15 + $0xc3] sm:$0xff] }
 0x118   : > { %v4946_v39 = vpop.f32.mrf.mxu1 }
 0x119   : > { %v4949_v36 = vadd.f32 %v1649_v50, %v1365_v17  ;;  %v4951_v58 = vpop.f32.mrf.mxu0  ;;  %v989_v19 = vadd.f32 %v4946_v39, %v4708_v1 }
 0x11b   : > { %4085 = vmatmul.msk.f32.gmra.mxu1 %vm358_vm1, %v695_v47  ;;  %4118 = vmatmul.msk.f32.gmra.mxu2 %vm358_vm1, %v1452_v46  ;;  %v1455_v46 = vld [vmem:[%s4566_s15 + $0xca] sm:$0xff] }
 0x11c   : > { %4156 = vmatmul.msk.f32.gmra.mxu3 %vm358_vm1, %v1454_v23  ;;  %4193 = vmatmul.msk.f32.gmra.mxu0 %vm358_vm1, %v1835_v24  ;;  %v697_v24 = vld [vmem:[%s4566_s15 + $0xe9] sm:$0xff] }
 0x11e   : > { %v1270_v16 = vpop.f32.mrf.mxu2 }
 0x11f   : > { %v1366_v57 = vadd.f32 %v1270_v16, %v984_v38  ;;  %v1652_v5 = vpop.f32.mrf.mxu3 }
 0x120   : > { %v4961_v10 = vpop.f32.mrf.mxu1 }
 0x121   : > { %v4964_v33 = vadd.f32 %v1652_v5, %v1366_v57  ;;  %v4966_v31 = vpop.f32.mrf.mxu0  ;;  %v1837_v57 = vld [vmem:[%s4566_s15 + $0xcb] sm:$0xff]  ;;  %v990_v1 = vadd.f32 %v4961_v10, %v4723_v8 }
 0x123   : > { %4086 = vmatmul.msk.f32.gmra.mxu1 %vm358_vm1, %v696_v9  ;;  %4119 = vmatmul.msk.f32.gmra.mxu2 %vm358_vm1, %v1453_v2  ;;  %v1456_v2 = vld [vmem:[%s4566_s15 + $0xd2] sm:$0xff] }
 0x124   : > { %4157 = vmatmul.msk.f32.gmra.mxu3 %vm358_vm1, %v1455_v46  ;;  %4194 = vmatmul.msk.f32.gmra.mxu0 %vm358_vm1, %v1836_v0 }
 0x126   : > { %v1273_v37 = vpop.f32.mrf.mxu2 }
 0x127   : > { %v1367_v17 = vadd.f32 %v1273_v37, %v985_v45  ;;  %v1655_v50 = vpop.f32.mrf.mxu3  ;;  %v698_v45 = vld [vmem:[%s4566_s15 + $0xf1] sm:$0xff] }
 0x128   : > { %v4976_v47 = vpop.f32.mrf.mxu1 }
 0x129   : > { %v4979_v38 = vadd.f32 %v1655_v50, %v1367_v17  ;;  %v4981_v16 = vpop.f32.mrf.mxu0  ;;  %v1838_v50 = vld [vmem:[%s4566_s15 + $0xd3] sm:$0xff]  ;;  %v991_v8 = vadd.f32 %v4976_v47, %v4738_v15 }
 0x12b   : > { %4087 = vmatmul.msk.f32.gmra.mxu1 %vm358_vm1, %v697_v24  ;;  %4120 = vmatmul.msk.f32.gmra.mxu2 %vm358_vm1, %v1454_v23  ;;  %v1457_v23 = vld [vmem:[%s4566_s15 + $0xda] sm:$0xff] }
 0x12c   : > { %4158 = vmatmul.msk.f32.gmra.mxu3 %vm358_vm1, %v1456_v2  ;;  %4195 = vmatmul.msk.f32.gmra.mxu0 %vm358_vm1, %v1837_v57 }
 0x12e   : > { %v1276_v54 = vpop.f32.mrf.mxu2 }
 0x12f   : > { %v1368_v5 = vadd.f32 %v1276_v54, %v986_v52  ;;  %v1658_v9 = vpop.f32.mrf.mxu3  ;;  %v699_v54 = vld [vmem:[%s4566_s15 + $0xf9] sm:$0xff] }
 0x130   : > { %v4991_v0 = vpop.f32.mrf.mxu1 }
 0x131   : > { %v4994_v37 = vadd.f32 %v1658_v9, %v1368_v5  ;;  %v4996_v17 = vpop.f32.mrf.mxu0  ;;  %v992_v15 = vadd.f32 %v4991_v0, %v4753_v22  ;;  %v4246_v22 = vld [vmem:[%s5957_s1 + $0x18] sm:$0xf] }
 0x132   : > { %4247 = vmatpush.msk.msra.mxu2 %vm467_vm0, %v4246_v22 }
 0x133   : > { %4088 = vmatmul.msk.f32.gmra.mxu1 %vm358_vm1, %v698_v45  ;;  %4121 = vmatmul.msk.f32.gmra.mxu2 %vm358_vm1, %v1455_v46  ;;  %v1458_v46 = vld [vmem:[%s4566_s15 + $0xe2] sm:$0xff] }
 0x134   : > { %4159 = vmatmul.msk.f32.gmra.mxu3 %vm358_vm1, %v1457_v23  ;;  %4196 = vmatmul.msk.f32.gmra.mxu0 %vm358_vm1, %v1838_v50  ;;  %v1839_v45 = vld [vmem:[%s4566_s15 + $0xdb] sm:$0xff] }
 0x136   : > { %v1279_v25 = vpop.f32.mrf.mxu2 }
 0x137   : > { %v1369_v24 = vadd.f32 %v1279_v25, %v987_v59  ;;  %v1661_v57 = vpop.f32.mrf.mxu3 }
 0x138   : > { %v5006_v52 = vpop.f32.mrf.mxu1 }
 0x139   : > { %v5009_v5 = vadd.f32 %v1661_v57, %v1369_v24  ;;  %v5011_v9 = vpop.f32.mrf.mxu0  ;;  %v700_v24 = vld [vmem:[%s4566_s15 + $0x101] sm:$0xff]  ;;  %v993_v0 = vadd.f32 %v5006_v52, %v4768_v29  ;;  %v1464_v29 = vld [vmem:[%s4566_s15 + $0x112] sm:$0xff] }
 0x13a   : > { %5966 = vst [vmem:[#allocation8_spill] sm:$0xff] %v5011_v9  ;;  %v1845_v52 = vld [vmem:[%s4566_s15 + $0x10b] sm:$0xff] }
 0x13b   : > { %5965 = vst [vmem:[#allocation7_spill] sm:$0xff] %v5009_v5  ;;  %4089 = vmatmul.msk.f32.gmra.mxu1 %vm358_vm1, %v699_v54  ;;  %4122 = vmatmul.msk.f32.gmra.mxu2 %vm358_vm1, %v1456_v2  ;;  %v1459_v54 = vld [vmem:[%s4566_s15 + $0xea] sm:$0xff] }
 0x13c   : > { %4160 = vmatmul.msk.f32.gmra.mxu3 %vm358_vm1, %v1458_v46  ;;  %4197 = vmatmul.msk.f32.gmra.mxu0 %vm358_vm1, %v1839_v45  ;;  %v1840_v2 = vld [vmem:[%s4566_s15 + $0xe3] sm:$0xff]  ;;  %v4208_v45 = vld [vmem:[%s5957_s1 + $0x14] sm:$0xf] }
 0x13d   : > { %4209 = vmatpush.msk.msra.mxu1 %vm467_vm0, %v4208_v45  ;;  %v1841_v45 = vld [vmem:[%s4566_s15 + $0xeb] sm:$0xff] }
 0x13e   : > { %v1282_v3 = vpop.f32.mrf.mxu2 }
 0x13f   : > { %v1370_v50 = vadd.f32 %v1282_v3, %v988_v4  ;;  %v1664_v59 = vpop.f32.mrf.mxu3 }
 0x140   : > { %v5021_v25 = vpop.f32.mrf.mxu1 }
 0x141   : > { %v5024_v57 = vadd.f32 %v1664_v59, %v1370_v50  ;;  %v5026_v9 = vpop.f32.mrf.mxu0  ;;  %v701_v59 = vld [vmem:[%s4566_s15 + $0x109] sm:$0xff]  ;;  %v994_v22 = vadd.f32 %v5021_v25, %v4719_v6  ;;  %v1465_v6 = vld [vmem:[%s4566_s15 + $0x11a] sm:$0xff] }
 0x142   : > { %5968 = vst [vmem:[#allocation10_spill] sm:$0xff] %v5026_v9  ;;  %v1842_v9 = vld [vmem:[%s4566_s15 + $0xf3] sm:$0xff] }
 0x143   : > { %5967 = vst [vmem:[#allocation9_spill] sm:$0xff] %v5024_v57  ;;  %4090 = vmatmul.msk.f32.gmra.mxu1 %vm358_vm1, %v700_v24  ;;  %4123 = vmatmul.msk.f32.gmra.mxu2 %vm358_vm1, %v1457_v23  ;;  %v1460_v23 = vld [vmem:[%s4566_s15 + $0xf2] sm:$0xff]  ;;  %v1843_v57 = vld [vmem:[%s4566_s15 + $0xfb] sm:$0xff] }
 0x144   : > { %4161 = vmatmul.msk.f32.gmra.mxu3 %vm358_vm1, %v1459_v54  ;;  %4198 = vmatmul.msk.f32.gmra.mxu0 %vm358_vm1, %v1840_v2  ;;  %v1846_v25 = vld [vmem:[%s4566_s15 + $0x113] sm:$0xff] }
 0x146   : > { %v1285_v43 = vpop.f32.mrf.mxu2 }
 0x147   : > { %v1371_v4 = vadd.f32 %v1285_v43, %v989_v19  ;;  %v1667_v3 = vpop.f32.mrf.mxu3 }
 0x148   : > { %v5040_v50 = vpop.f32.mrf.mxu1 }
 0x149   : > { %v5043_v5 = vadd.f32 %v1667_v3, %v1371_v4  ;;  %v5045_v24 = vpop.f32.mrf.mxu0  ;;  %v702_v4 = vld [vmem:[%s4566_s15 + $0x111] sm:$0xff] }
 0x14a   : > { %5970 = vst [vmem:[#allocation12_spill] sm:$0xff] %v5045_v24 }
 0x14b   : > { %5969 = vst [vmem:[#allocation11_spill] sm:$0xff] %v5043_v5  ;;  %4091 = vmatmul.msk.f32.gmra.mxu1 %vm358_vm1, %v701_v59  ;;  %4124 = vmatmul.msk.f32.gmra.mxu2 %vm358_vm1, %v1458_v46  ;;  %v1461_v46 = vld [vmem:[%s4566_s15 + $0xfa] sm:$0xff]  ;;  %v1466_v5 = vld [vmem:[%s4566_s15 + $0x122] sm:$0xff] }
 0x14c   : > { %4162 = vmatmul.msk.f32.gmra.mxu3 %vm358_vm1, %v1460_v23  ;;  %4199 = vmatmul.msk.f32.gmra.mxu0 %vm358_vm1, %v1841_v45 }
 0x14e   : > { %v1288_v39 = vpop.f32.mrf.mxu2 }
 0x14f   : > { %v1372_v2 = vadd.f32 %v1288_v39, %v990_v1  ;;  %v1670_v19 = vpop.f32.mrf.mxu3 }
 0x150   : > { %v5055_v43 = vpop.f32.mrf.mxu1 }
 0x151   : > { %v5058_v3 = vadd.f32 %v1670_v19, %v1372_v2  ;;  %v5060_v59 = vpop.f32.mrf.mxu0  ;;  %v703_v2 = vld [vmem:[%s4566_s15 + $0x119] sm:$0xff] }
 0x152   : > { %5972 = vst [vmem:[#allocation14_spill] sm:$0xff] %v5060_v59  ;;  %v1847_v59 = vld [vmem:[%s4566_s15 + $0x11b] sm:$0xff] }
 0x153   : > { %5971 = vst [vmem:[#allocation13_spill] sm:$0xff] %v5058_v3  ;;  %4092 = vmatmul.msk.f32.gmra.mxu1 %vm358_vm1, %v702_v4  ;;  %4125 = vmatmul.msk.f32.gmra.mxu2 %vm358_vm1, %v1459_v54  ;;  %v1462_v54 = vld [vmem:[%s4566_s15 + $0x102] sm:$0xff]  ;;  %v1467_v3 = vld [vmem:[%s4566_s15 + $0x12a] sm:$0xff] }
 0x154   : > { %4163 = vmatmul.msk.f32.gmra.mxu3 %vm358_vm1, %v1461_v46  ;;  %4200 = vmatmul.msk.f32.gmra.mxu0 %vm358_vm1, %v1842_v9 }
 0x156   : > { %v1291_v10 = vpop.f32.mrf.mxu2 }
 0x157   : > { %v1373_v45 = vadd.f32 %v1291_v10, %v991_v8  ;;  %v1673_v1 = vpop.f32.mrf.mxu3 }
 0x158   : > { %v5070_v39 = vpop.f32.mrf.mxu1 }
 0x159   : > { %v5073_v19 = vadd.f32 %v1673_v1, %v1373_v45  ;;  %v5075_v4 = vpop.f32.mrf.mxu0  ;;  %v2196_v45 = vld [vmem:[%s4566_s15 + $0x14] sm:$0xff] }
 0x15a   : > { %5974 = vst [vmem:[#allocation16_spill] sm:$0xff] %v5075_v4  ;;  %v1849_v4 = vld [vmem:[%s4566_s15 + $0x12b] sm:$0xff] }
 0x15b   : > { %5973 = vst [vmem:[#allocation15_spill] sm:$0xff] %v5073_v19  ;;  %4093 = vmatmul.msk.f32.gmra.mxu1 %vm358_vm1, %v703_v2  ;;  %4126 = vmatmul.msk.f32.gmra.mxu2 %vm358_vm1, %v1460_v23  ;;  %v1463_v2 = vld [vmem:[%s4566_s15 + $0x10a] sm:$0xff] }
 0x15c   : > { %4164 = vmatmul.msk.f32.gmra.mxu3 %vm358_vm1, %v1462_v54  ;;  %4201 = vmatmul.msk.f32.gmra.mxu0 %vm358_vm1, %v1843_v57  ;;  %v1844_v23 = vld [vmem:[%s4566_s15 + $0x103] sm:$0xff] }
 0x15e   : > { %v1294_v47 = vpop.f32.mrf.mxu2 }
 0x15f   : > { %v1374_v9 = vadd.f32 %v1294_v47, %v992_v15  ;;  %v1676_v8 = vpop.f32.mrf.mxu3  ;;  %v4284_v47 = vld [vmem:[%s5957_s1 + $0x1c] sm:$0xf] }
 0x160   : > { %v5085_v10 = vpop.f32.mrf.mxu1  ;;  %4285 = vmatpush.msk.msra.mxu3 %vm467_vm0, %v4284_v47 }
 0x161   : > { %v5088_v1 = vadd.f32 %v1676_v8, %v1374_v9  ;;  %v5090_v24 = vpop.f32.mrf.mxu0  ;;  %v2197_v8 = vld [vmem:[%s4566_s15 + $0x1c] sm:$0xff] }
 0x163   : > { %4127 = vmatmul.msk.f32.gmra.mxu2 %vm358_vm1, %v1461_v46  ;;  %4210 = vmatmul.msk.f32.vlgmr.msra.gmra.mxu1 %vm358_vm1, %v2196_v45 }
 0x164   : > { %4165 = vmatmul.msk.f32.gmra.mxu3 %vm358_vm1, %v1463_v2  ;;  %4202 = vmatmul.msk.f32.gmra.mxu0 %vm358_vm1, %v1844_v23 }
 0x166   : > { %v1297_v57 = vpop.f32.mrf.mxu2 }
 0x167   : > { %v1375_v15 = vadd.f32 %v1297_v57, %v993_v0  ;;  %v1679_v46 = vpop.f32.mrf.mxu3 }
 0x168   : > { %v5107_v9 = vpop.f32.mrf.mxu1 }
 0x169   : > { %v5111_v45 = vadd.f32 %v1679_v46, %v1375_v15  ;;  %v5113_v23 = vpop.f32.mrf.mxu0  ;;  %v4322_v46 = vld [vmem:[%s5957_s1 + $0x20] sm:$0xf] }
 0x16a   : > { %5976 = vst [vmem:[#allocation18_spill] sm:$0xff] %v5113_v23  ;;  %4323 = vmatpush.msk.msra.mxu0 %vm467_vm0, %v4322_v46  ;;  %v2199_v23 = vld [vmem:[%s4566_s15 + $0x2c] sm:$0xff] }
 0x16b   : > { %5975 = vst [vmem:[#allocation17_spill] sm:$0xff] %v5111_v45  ;;  %4128 = vmatmul.msk.f32.gmra.mxu2 %vm358_vm1, %v1462_v54  ;;  %4211 = vmatmul.msk.f32.gmra.mxu1 %vm358_vm1, %v2197_v8  ;;  %v2198_v54 = vld [vmem:[%s4566_s15 + $0x24] sm:$0xff] }
 0x16c   : > { %4166 = vmatmul.msk.f32.gmra.mxu3 %vm358_vm1, %v1464_v29  ;;  %4203 = vmatmul.msk.f32.gmra.mxu0 %vm358_vm1, %v1845_v52 }
 0x16e   : > { %v1300_v0 = vpop.f32.mrf.mxu2 }
 0x16f   : > { %v1376_v57 = vadd.f32 %v1300_v0, %v994_v22  ;;  %v1682_v15 = vpop.f32.mrf.mxu3  ;;  %v995_v22 = vadd.f32 %v5040_v50, %v4734_v13  ;;  %v996_v13 = vadd.f32 %v5055_v43, %v4749_v20  ;;  %v997_v20 = vadd.f32 %v5070_v39, %v4764_v27 }
 0x170   : > { %v5126_v47 = vpop.f32.mrf.mxu1  ;;  %v998_v27 = vadd.f32 %v5085_v10, %v4779_v34  ;;  %v999_v34 = vadd.f32 %v5107_v9, %v4794_v41 }
 0x171   : > { %v5130_v8 = vadd.f32 %v1682_v15, %v1376_v57  ;;  %v5132_v52 = vpop.f32.mrf.mxu0  ;;  %v1000_v41 = vadd.f32 %v5126_v47, %v4809_v48 }
 0x173   : > { %4129 = vmatmul.msk.f32.gmra.mxu2 %vm358_vm1, %v1463_v2  ;;  %4212 = vmatmul.msk.f32.gmra.mxu1 %vm358_vm1, %v2198_v54 }
 0x174   : > { %4167 = vmatmul.msk.f32.gmra.mxu3 %vm358_vm1, %v1465_v6  ;;  %4204 = vmatmul.msk.f32.gmra.mxu0 %vm358_vm1, %v1846_v25 }
 0x176   : > { %v1303_v0 = vpop.f32.mrf.mxu2 }
 0x177   : > { %v1377_v57 = vadd.f32 %v1303_v0, %v995_v22  ;;  %v1685_v15 = vpop.f32.mrf.mxu3 }
 0x178   : > { %v5142_v46 = vpop.f32.mrf.mxu1 }
 0x179   : > { %v5145_v45 = vadd.f32 %v1685_v15, %v1377_v57  ;;  %v5147_v2 = vpop.f32.mrf.mxu0  ;;  %v2200_v57 = vld [vmem:[%s4566_s15 + $0x34] sm:$0xff]  ;;  %v1001_v48 = vadd.f32 %v5142_v46, %v4824_v55 }
 0x17b   : > { %4130 = vmatmul.msk.f32.gmra.mxu2 %vm358_vm1, %v1464_v29  ;;  %4213 = vmatmul.msk.f32.gmra.mxu1 %vm358_vm1, %v2199_v23 }
 0x17c   : > { %4168 = vmatmul.msk.f32.gmra.mxu3 %vm358_vm1, %v1466_v5  ;;  %4205 = vmatmul.msk.f32.gmra.mxu0 %vm358_vm1, %v1847_v59  ;;  %v1848_v5 = vld [vmem:[%s4566_s15 + $0x123] sm:$0xff] }
 0x17e   : > { %v1306_v50 = vpop.f32.mrf.mxu2 }
 0x17f   : > { %v1378_v25 = vadd.f32 %v1306_v50, %v996_v13  ;;  %v1688_v22 = vpop.f32.mrf.mxu3 }
 0x180   : > { %v5157_v0 = vpop.f32.mrf.mxu1 }
 0x181   : > { %v5160_v15 = vadd.f32 %v1688_v22, %v1378_v25  ;;  %v5162_v29 = vpop.f32.mrf.mxu0  ;;  %v2201_v25 = vld [vmem:[%s4566_s15 + $0x3c] sm:$0xff]  ;;  %v1002_v55 = vadd.f32 %v5157_v0, %v4839_v62 }
 0x183   : > { %4131 = vmatmul.msk.f32.gmra.mxu2 %vm358_vm1, %v1465_v6  ;;  %4214 = vmatmul.msk.f32.gmra.mxu1 %vm358_vm1, %v2200_v57 }
 0x184   : > { %4169 = vmatmul.msk.f32.gmra.mxu3 %vm358_vm1, %v1467_v3  ;;  %4206 = vmatmul.msk.f32.gmra.mxu0 %vm358_vm1, %v1848_v5  ;;  %v2960_v3 = vld [vmem:[%s4566_s15 + $0x25] sm:$0xff] }
 0x186   : > { %v1309_v43 = vpop.f32.mrf.mxu2 }
 0x187   : > { %v1379_v59 = vadd.f32 %v1309_v43, %v997_v20  ;;  %v1691_v13 = vpop.f32.mrf.mxu3 }
 0x188   : > { %v5172_v50 = vpop.f32.mrf.mxu1 }
 0x189   : > { %v5175_v22 = vadd.f32 %v1691_v13, %v1379_v59  ;;  %v5177_v6 = vpop.f32.mrf.mxu0  ;;  %v2202_v59 = vld [vmem:[%s4566_s15 + $0x44] sm:$0xff]  ;;  %v1003_v62 = vadd.f32 %v5172_v50, %v4854_v11 }
 0x18b   : > { %4215 = vmatmul.msk.f32.gmra.mxu1 %vm358_vm1, %v2201_v25  ;;  %4248 = vmatmul.msk.f32.vlgmr.msra.gmra.mxu2 %vm358_vm1, %v2198_v54  ;;  %v2961_v54 = vld [vmem:[%s4566_s15 + $0x2d] sm:$0xff] }
 0x18c   : > { %4207 = vmatmul.msk.f32.gmra.mxu0 %vm358_vm1, %v1849_v4  ;;  %4286 = vmatmul.msk.f32.vlgmr.msra.gmra.mxu3 %vm358_vm1, %v2960_v3  ;;  %v3342_v4 = vld [vmem:[%s4566_s15 + $0x26] sm:$0xff] }
 0x18e   : > { %v1312_v39 = vpop.f32.mrf.mxu2 }
 0x18f   : > { %v1380_v5 = vadd.f32 %v1312_v39, %v998_v27  ;;  %v1694_v20 = vpop.f32.mrf.mxu3 }
 0x190   : > { %v5187_v43 = vpop.f32.mrf.mxu1 }
 0x191   : > { %v5190_v13 = vadd.f32 %v1694_v20, %v1380_v5  ;;  %v5192_v19 = vpop.f32.mrf.mxu0  ;;  %v2203_v5 = vld [vmem:[%s4566_s15 + $0x4c] sm:$0xff]  ;;  %v1004_v11 = vadd.f32 %v5187_v43, %v4721_v7 }
 0x192   : > { %5977 = vst [vmem:[#allocation19_spill] sm:$0xff] %v5192_v19 }
 0x193   : > { %4216 = vmatmul.msk.f32.gmra.mxu1 %vm358_vm1, %v2202_v59  ;;  %4249 = vmatmul.msk.f32.gmra.mxu2 %vm358_vm1, %v2199_v23  ;;  %v2962_v23 = vld [vmem:[%s4566_s15 + $0x35] sm:$0xff] }
 0x194   : > { %4287 = vmatmul.msk.f32.gmra.mxu3 %vm358_vm1, %v2961_v54  ;;  %4324 = vmatmul.msk.f32.vlgmr.msra.gmra.mxu0 %vm358_vm1, %v3342_v4  ;;  %v3343_v54 = vld [vmem:[%s4566_s15 + $0x2e] sm:$0xff] }
 0x196   : > { %v1315_v10 = vpop.f32.mrf.mxu2 }
 0x197   : > { %v1381_v3 = vadd.f32 %v1315_v10, %v999_v34  ;;  %v1697_v27 = vpop.f32.mrf.mxu3 }
 0x198   : > { %v5202_v39 = vpop.f32.mrf.mxu1 }
 0x199   : > { %v5205_v20 = vadd.f32 %v1697_v27, %v1381_v3  ;;  %v5207_v19 = vpop.f32.mrf.mxu0  ;;  %v2204_v3 = vld [vmem:[%s4566_s15 + $0x54] sm:$0xff]  ;;  %v1005_v7 = vadd.f32 %v5202_v39, %v4736_v14 }
 0x19a   : > { %5978 = vst [vmem:[#allocation20_spill] sm:$0xff] %v5207_v19 }
 0x19b   : > { %4217 = vmatmul.msk.f32.gmra.mxu1 %vm358_vm1, %v2203_v5  ;;  %4250 = vmatmul.msk.f32.gmra.mxu2 %vm358_vm1, %v2200_v57  ;;  %v2963_v57 = vld [vmem:[%s4566_s15 + $0x3d] sm:$0xff] }
 0x19c   : > { %4288 = vmatmul.msk.f32.gmra.mxu3 %vm358_vm1, %v2962_v23  ;;  %4325 = vmatmul.msk.f32.gmra.mxu0 %vm358_vm1, %v3343_v54  ;;  %v3344_v23 = vld [vmem:[%s4566_s15 + $0x36] sm:$0xff] }
 0x19e   : > { %v1318_v9 = vpop.f32.mrf.mxu2 }
 0x19f   : > { %v1382_v4 = vadd.f32 %v1318_v9, %v1000_v41  ;;  %v1700_v34 = vpop.f32.mrf.mxu3 }
 0x1a0   : > { %v5217_v10 = vpop.f32.mrf.mxu1 }
 0x1a1   : > { %v5220_v27 = vadd.f32 %v1700_v34, %v1382_v4  ;;  %v5222_v19 = vpop.f32.mrf.mxu0  ;;  %v2205_v4 = vld [vmem:[%s4566_s15 + $0x5c] sm:$0xff]  ;;  %v1006_v14 = vadd.f32 %v5217_v10, %v4751_v21 }
 0x1a2   : > { %5979 = vst [vmem:[#allocation21_spill] sm:$0xff] %v5222_v19 }
 0x1a3   : > { %4218 = vmatmul.msk.f32.gmra.mxu1 %vm358_vm1, %v2204_v3  ;;  %4251 = vmatmul.msk.f32.gmra.mxu2 %vm358_vm1, %v2201_v25  ;;  %v2964_v25 = vld [vmem:[%s4566_s15 + $0x45] sm:$0xff] }
 0x1a4   : > { %4289 = vmatmul.msk.f32.gmra.mxu3 %vm358_vm1, %v2963_v57  ;;  %4326 = vmatmul.msk.f32.gmra.mxu0 %vm358_vm1, %v3344_v23  ;;  %v3345_v57 = vld [vmem:[%s4566_s15 + $0x3e] sm:$0xff] }
 0x1a6   : > { %v1321_v47 = vpop.f32.mrf.mxu2 }
 0x1a7   : > { %v1383_v54 = vadd.f32 %v1321_v47, %v1001_v48  ;;  %v1703_v41 = vpop.f32.mrf.mxu3 }
 0x1a8   : > { %v5232_v9 = vpop.f32.mrf.mxu1 }
 0x1a9   : > { %v5235_v34 = vadd.f32 %v1703_v41, %v1383_v54  ;;  %v5237_v19 = vpop.f32.mrf.mxu0  ;;  %v2206_v54 = vld [vmem:[%s4566_s15 + $0x64] sm:$0xff]  ;;  %v1007_v21 = vadd.f32 %v5232_v9, %v4766_v28 }
 0x1aa   : > { %5980 = vst [vmem:[#allocation22_spill] sm:$0xff] %v5237_v19 }
 0x1ab   : > { %4219 = vmatmul.msk.f32.gmra.mxu1 %vm358_vm1, %v2205_v4  ;;  %4252 = vmatmul.msk.f32.gmra.mxu2 %vm358_vm1, %v2202_v59  ;;  %v2965_v59 = vld [vmem:[%s4566_s15 + $0x4d] sm:$0xff] }
 0x1ac   : > { %4290 = vmatmul.msk.f32.gmra.mxu3 %vm358_vm1, %v2964_v25  ;;  %4327 = vmatmul.msk.f32.gmra.mxu0 %vm358_vm1, %v3345_v57  ;;  %v3346_v25 = vld [vmem:[%s4566_s15 + $0x46] sm:$0xff] }
 0x1ae   : > { %v1324_v46 = vpop.f32.mrf.mxu2 }
 0x1af   : > { %v1384_v23 = vadd.f32 %v1324_v46, %v1002_v55  ;;  %v1706_v48 = vpop.f32.mrf.mxu3 }
 0x1b0   : > { %v5247_v47 = vpop.f32.mrf.mxu1 }
 0x1b1   : > { %v5250_v41 = vadd.f32 %v1706_v48, %v1384_v23  ;;  %v5252_v19 = vpop.f32.mrf.mxu0  ;;  %v2207_v23 = vld [vmem:[%s4566_s15 + $0x6c] sm:$0xff]  ;;  %v1008_v28 = vadd.f32 %v5247_v47, %v4781_v35 }
 0x1b2   : > { %5981 = vst [vmem:[#allocation23_spill] sm:$0xff] %v5252_v19 }
 0x1b3   : > { %4220 = vmatmul.msk.f32.gmra.mxu1 %vm358_vm1, %v2206_v54  ;;  %4253 = vmatmul.msk.f32.gmra.mxu2 %vm358_vm1, %v2203_v5  ;;  %v2966_v5 = vld [vmem:[%s4566_s15 + $0x55] sm:$0xff] }
 0x1b4   : > { %4291 = vmatmul.msk.f32.gmra.mxu3 %vm358_vm1, %v2965_v59  ;;  %4328 = vmatmul.msk.f32.gmra.mxu0 %vm358_vm1, %v3346_v25  ;;  %v3347_v59 = vld [vmem:[%s4566_s15 + $0x4e] sm:$0xff] }
 0x1b6   : > { %v1327_v0 = vpop.f32.mrf.mxu2 }
 0x1b7   : > { %v1385_v57 = vadd.f32 %v1327_v0, %v1003_v62  ;;  %v1709_v55 = vpop.f32.mrf.mxu3 }
 0x1b8   : > { %v5262_v46 = vpop.f32.mrf.mxu1 }
 0x1b9   : > { %v5265_v48 = vadd.f32 %v1709_v55, %v1385_v57  ;;  %v5267_v19 = vpop.f32.mrf.mxu0  ;;  %v2208_v57 = vld [vmem:[%s4566_s15 + $0x74] sm:$0xff]  ;;  %v1009_v35 = vadd.f32 %v5262_v46, %v4796_v42 }
 0x1ba   : > { %5983 = vst [vmem:[#allocation25_spill] sm:$0xff] %v5267_v19 }
 0x1bb   : > { %5982 = vst [vmem:[#allocation24_spill] sm:$0xff] %v5265_v48  ;;  %4221 = vmatmul.msk.f32.gmra.mxu1 %vm358_vm1, %v2207_v23  ;;  %4254 = vmatmul.msk.f32.gmra.mxu2 %vm358_vm1, %v2204_v3  ;;  %v2967_v3 = vld [vmem:[%s4566_s15 + $0x5d] sm:$0xff] }
 0x1bc   : > { %4292 = vmatmul.msk.f32.gmra.mxu3 %vm358_vm1, %v2966_v5  ;;  %4329 = vmatmul.msk.f32.gmra.mxu0 %vm358_vm1, %v3347_v59  ;;  %v3348_v5 = vld [vmem:[%s4566_s15 + $0x56] sm:$0xff] }
 0x1be   : > { %v1330_v50 = vpop.f32.mrf.mxu2 }
 0x1bf   : > { %v1386_v25 = vadd.f32 %v1330_v50, %v1004_v11  ;;  %v1712_v62 = vpop.f32.mrf.mxu3 }
 0x1c0   : > { %v5277_v0 = vpop.f32.mrf.mxu1 }
 0x1c1   : > { %v5280_v55 = vadd.f32 %v1712_v62, %v1386_v25  ;;  %v5282_v19 = vpop.f32.mrf.mxu0  ;;  %v2209_v25 = vld [vmem:[%s4566_s15 + $0x7c] sm:$0xff]  ;;  %v1010_v42 = vadd.f32 %v5277_v0, %v4811_v49 }
 0x1c2   : > { %5985 = vst [vmem:[#allocation27_spill] sm:$0xff] %v5282_v19 }
 0x1c3   : > { %5984 = vst [vmem:[#allocation26_spill] sm:$0xff] %v5280_v55  ;;  %4222 = vmatmul.msk.f32.gmra.mxu1 %vm358_vm1, %v2208_v57  ;;  %4255 = vmatmul.msk.f32.gmra.mxu2 %vm358_vm1, %v2205_v4  ;;  %v2968_v4 = vld [vmem:[%s4566_s15 + $0x65] sm:$0xff] }
 0x1c4   : > { %4293 = vmatmul.msk.f32.gmra.mxu3 %vm358_vm1, %v2967_v3  ;;  %4330 = vmatmul.msk.f32.gmra.mxu0 %vm358_vm1, %v3348_v5  ;;  %v3349_v3 = vld [vmem:[%s4566_s15 + $0x5e] sm:$0xff] }
 0x1c6   : > { %v1333_v43 = vpop.f32.mrf.mxu2 }
 0x1c7   : > { %v1387_v59 = vadd.f32 %v1333_v43, %v1005_v7  ;;  %v1715_v11 = vpop.f32.mrf.mxu3 }
 0x1c8   : > { %v5292_v50 = vpop.f32.mrf.mxu1 }
 0x1c9   : > { %v5295_v62 = vadd.f32 %v1715_v11, %v1387_v59  ;;  %v5297_v48 = vpop.f32.mrf.mxu0  ;;  %v2210_v59 = vld [vmem:[%s4566_s15 + $0x84] sm:$0xff]  ;;  %v1011_v49 = vadd.f32 %v5292_v50, %v4826_v56 }
 0x1ca   : > { %5987 = vst [vmem:[#allocation29_spill] sm:$0xff] %v5297_v48 }
 0x1cb   : > { %5986 = vst [vmem:[#allocation28_spill] sm:$0xff] %v5295_v62  ;;  %4223 = vmatmul.msk.f32.gmra.mxu1 %vm358_vm1, %v2209_v25  ;;  %4256 = vmatmul.msk.f32.gmra.mxu2 %vm358_vm1, %v2206_v54  ;;  %v2969_v54 = vld [vmem:[%s4566_s15 + $0x6d] sm:$0xff] }
 0x1cc   : > { %4294 = vmatmul.msk.f32.gmra.mxu3 %vm358_vm1, %v2968_v4  ;;  %4331 = vmatmul.msk.f32.gmra.mxu0 %vm358_vm1, %v3349_v3  ;;  %v3350_v4 = vld [vmem:[%s4566_s15 + $0x66] sm:$0xff] }
 0x1ce   : > { %v1336_v39 = vpop.f32.mrf.mxu2 }
 0x1cf   : > { %v1388_v5 = vadd.f32 %v1336_v39, %v1006_v14  ;;  %v1718_v7 = vpop.f32.mrf.mxu3 }
 0x1d0   : > { %v5307_v43 = vpop.f32.mrf.mxu1 }
 0x1d1   : > { %v5310_v11 = vadd.f32 %v1718_v7, %v1388_v5  ;;  %v5312_v19 = vpop.f32.mrf.mxu0  ;;  %v2211_v5 = vld [vmem:[%s4566_s15 + $0x8c] sm:$0xff]  ;;  %v1012_v56 = vadd.f32 %v5307_v43, %v4841_v63 }
 0x1d2   : > { %5989 = vst [vmem:[#allocation31_spill] sm:$0xff] %v5312_v19 }
 0x1d3   : > { %5988 = vst [vmem:[#allocation30_spill] sm:$0xff] %v5310_v11  ;;  %4224 = vmatmul.msk.f32.gmra.mxu1 %vm358_vm1, %v2210_v59  ;;  %4257 = vmatmul.msk.f32.gmra.mxu2 %vm358_vm1, %v2207_v23  ;;  %v2970_v23 = vld [vmem:[%s4566_s15 + $0x75] sm:$0xff]  ;;  %v3370_v11 = vld [vmem:[%s4566_s15 + $0x106] sm:$0xff] }
 0x1d4   : > { %4295 = vmatmul.msk.f32.gmra.mxu3 %vm358_vm1, %v2969_v54  ;;  %4332 = vmatmul.msk.f32.gmra.mxu0 %vm358_vm1, %v3350_v4  ;;  %v3351_v54 = vld [vmem:[%s4566_s15 + $0x6e] sm:$0xff] }
 0x1d6   : > { %v1339_v10 = vpop.f32.mrf.mxu2 }
 0x1d7   : > { %v1389_v3 = vadd.f32 %v1339_v10, %v1007_v21  ;;  %v1721_v14 = vpop.f32.mrf.mxu3 }
 0x1d8   : > { %v5322_v39 = vpop.f32.mrf.mxu1 }
 0x1d9   : > { %v5325_v7 = vadd.f32 %v1721_v14, %v1389_v3  ;;  %v5327_v55 = vpop.f32.mrf.mxu0  ;;  %v2212_v3 = vld [vmem:[%s4566_s15 + $0x94] sm:$0xff]  ;;  %v1013_v63 = vadd.f32 %v5322_v39, %v4856_v12 }
 0x1da   : > { %5991 = vst [vmem:[#allocation33_spill] sm:$0xff] %v5327_v55 }
 0x1db   : > { %5990 = vst [vmem:[#allocation32_spill] sm:$0xff] %v5325_v7  ;;  %4225 = vmatmul.msk.f32.gmra.mxu1 %vm358_vm1, %v2211_v5  ;;  %4258 = vmatmul.msk.f32.gmra.mxu2 %vm358_vm1, %v2208_v57  ;;  %v2971_v57 = vld [vmem:[%s4566_s15 + $0x7d] sm:$0xff]  ;;  %v2990_v7 = vld [vmem:[%s4566_s15 + $0x115] sm:$0xff] }
 0x1dc   : > { %4296 = vmatmul.msk.f32.gmra.mxu3 %vm358_vm1, %v2970_v23  ;;  %4333 = vmatmul.msk.f32.gmra.mxu0 %vm358_vm1, %v3351_v54  ;;  %v3352_v23 = vld [vmem:[%s4566_s15 + $0x76] sm:$0xff] }
 0x1de   : > { %v1342_v9 = vpop.f32.mrf.mxu2 }
 0x1df   : > { %v1390_v4 = vadd.f32 %v1342_v9, %v1008_v28  ;;  %v1724_v21 = vpop.f32.mrf.mxu3 }
 0x1e0   : > { %v5337_v10 = vpop.f32.mrf.mxu1 }
 0x1e1   : > { %v5340_v14 = vadd.f32 %v1724_v21, %v1390_v4  ;;  %v5342_v48 = vpop.f32.mrf.mxu0  ;;  %v2213_v4 = vld [vmem:[%s4566_s15 + $0x9c] sm:$0xff] }
 0x1e2   : > { %5993 = vst [vmem:[#allocation35_spill] sm:$0xff] %v5342_v48  ;;  %v3371_v48 = vld [vmem:[%s4566_s15 + $0x10e] sm:$0xff] }
 0x1e3   : > { %5992 = vst [vmem:[#allocation34_spill] sm:$0xff] %v5340_v14  ;;  %4226 = vmatmul.msk.f32.gmra.mxu1 %vm358_vm1, %v2212_v3  ;;  %4259 = vmatmul.msk.f32.gmra.mxu2 %vm358_vm1, %v2209_v25  ;;  %v2972_v25 = vld [vmem:[%s4566_s15 + $0x85] sm:$0xff] }
 0x1e4   : > { %4297 = vmatmul.msk.f32.gmra.mxu3 %vm358_vm1, %v2971_v57  ;;  %4334 = vmatmul.msk.f32.gmra.mxu0 %vm358_vm1, %v3352_v23  ;;  %v3353_v57 = vld [vmem:[%s4566_s15 + $0x7e] sm:$0xff] }
 0x1e6   : > { %v1345_v47 = vpop.f32.mrf.mxu2 }
 0x1e7   : > { %v1391_v54 = vadd.f32 %v1345_v47, %v1009_v35  ;;  %v1727_v28 = vpop.f32.mrf.mxu3 }
 0x1e8   : > { %v5352_v9 = vpop.f32.mrf.mxu1 }
 0x1e9   : > { %v5355_v21 = vadd.f32 %v1727_v28, %v1391_v54  ;;  %v5357_v62 = vpop.f32.mrf.mxu0  ;;  %v2214_v54 = vld [vmem:[%s4566_s15 + $0xa4] sm:$0xff] }
 0x1ea   : > { %5995 = vst [vmem:[#allocation37_spill] sm:$0xff] %v5357_v62 }
 0x1eb   : > { %5994 = vst [vmem:[#allocation36_spill] sm:$0xff] %v5355_v21  ;;  %4227 = vmatmul.msk.f32.gmra.mxu1 %vm358_vm1, %v2213_v4  ;;  %4260 = vmatmul.msk.f32.gmra.mxu2 %vm358_vm1, %v2210_v59  ;;  %v2973_v59 = vld [vmem:[%s4566_s15 + $0x8d] sm:$0xff] }
 0x1ec   : > { %4298 = vmatmul.msk.f32.gmra.mxu3 %vm358_vm1, %v2972_v25  ;;  %4335 = vmatmul.msk.f32.gmra.mxu0 %vm358_vm1, %v3353_v57  ;;  %v3354_v25 = vld [vmem:[%s4566_s15 + $0x86] sm:$0xff] }
 0x1ee   : > { %v1348_v46 = vpop.f32.mrf.mxu2 }
 0x1ef   : > { %v1392_v23 = vadd.f32 %v1348_v46, %v1010_v42  ;;  %v1730_v35 = vpop.f32.mrf.mxu3 }
 0x1f0   : > { %v5367_v47 = vpop.f32.mrf.mxu1 }
 0x1f1   : > { %v5370_v28 = vadd.f32 %v1730_v35, %v1392_v23  ;;  %v5372_v62 = vpop.f32.mrf.mxu0  ;;  %v2215_v23 = vld [vmem:[%s4566_s15 + $0xac] sm:$0xff] }
 0x1f2   : > { %5997 = vst [vmem:[#allocation39_spill] sm:$0xff] %v5372_v62 }
 0x1f3   : > { %5996 = vst [vmem:[#allocation38_spill] sm:$0xff] %v5370_v28  ;;  %4228 = vmatmul.msk.f32.gmra.mxu1 %vm358_vm1, %v2214_v54  ;;  %4261 = vmatmul.msk.f32.gmra.mxu2 %vm358_vm1, %v2211_v5  ;;  %v2974_v5 = vld [vmem:[%s4566_s15 + $0x95] sm:$0xff] }
 0x1f4   : > { %4299 = vmatmul.msk.f32.gmra.mxu3 %vm358_vm1, %v2973_v59  ;;  %4336 = vmatmul.msk.f32.gmra.mxu0 %vm358_vm1, %v3354_v25  ;;  %v3355_v59 = vld [vmem:[%s4566_s15 + $0x8e] sm:$0xff] }
 0x1f6   : > { %v1351_v0 = vpop.f32.mrf.mxu2 }
 0x1f7   : > { %v1393_v57 = vadd.f32 %v1351_v0, %v1011_v49  ;;  %v1733_v42 = vpop.f32.mrf.mxu3 }
 0x1f8   : > { %v5382_v46 = vpop.f32.mrf.mxu1 }
 0x1f9   : > { %v5385_v35 = vadd.f32 %v1733_v42, %v1393_v57  ;;  %v5387_v62 = vpop.f32.mrf.mxu0  ;;  %v2216_v57 = vld [vmem:[%s4566_s15 + $0xb4] sm:$0xff] }
 0x1fa   : > { %5999 = vst [vmem:[#allocation41_spill] sm:$0xff] %v5387_v62 }
 0x1fb   : > { %5998 = vst [vmem:[#allocation40_spill] sm:$0xff] %v5385_v35  ;;  %4229 = vmatmul.msk.f32.gmra.mxu1 %vm358_vm1, %v2215_v23  ;;  %4262 = vmatmul.msk.f32.gmra.mxu2 %vm358_vm1, %v2212_v3  ;;  %v2975_v3 = vld [vmem:[%s4566_s15 + $0x9d] sm:$0xff] }
 0x1fc   : > { %4300 = vmatmul.msk.f32.gmra.mxu3 %vm358_vm1, %v2974_v5  ;;  %4337 = vmatmul.msk.f32.gmra.mxu0 %vm358_vm1, %v3355_v59  ;;  %v3356_v5 = vld [vmem:[%s4566_s15 + $0x96] sm:$0xff] }
 0x1fe   : > { %v1354_v50 = vpop.f32.mrf.mxu2 }
 0x1ff   : > { %v1394_v25 = vadd.f32 %v1354_v50, %v1012_v56  ;;  %v1736_v49 = vpop.f32.mrf.mxu3 }
 0x200   : > { %v5397_v0 = vpop.f32.mrf.mxu1 }
 0x201   : > { %v5400_v42 = vadd.f32 %v1736_v49, %v1394_v25  ;;  %v5402_v28 = vpop.f32.mrf.mxu0  ;;  %v2217_v25 = vld [vmem:[%s4566_s15 + $0xbc] sm:$0xff] }
 0x202   : > { %6001 = vst [vmem:[#allocation43_spill] sm:$0xff] %v5402_v28 }
 0x203   : > { %6000 = vst [vmem:[#allocation42_spill] sm:$0xff] %v5400_v42  ;;  %4230 = vmatmul.msk.f32.gmra.mxu1 %vm358_vm1, %v2216_v57  ;;  %4263 = vmatmul.msk.f32.gmra.mxu2 %vm358_vm1, %v2213_v4  ;;  %v2976_v4 = vld [vmem:[%s4566_s15 + $0xa5] sm:$0xff] }
 0x204   : > { %4301 = vmatmul.msk.f32.gmra.mxu3 %vm358_vm1, %v2975_v3  ;;  %4338 = vmatmul.msk.f32.gmra.mxu0 %vm358_vm1, %v3356_v5  ;;  %v3357_v3 = vld [vmem:[%s4566_s15 + $0x9e] sm:$0xff]  ;;  %v2124_v5 = vadd.f32 %v4876_v44, %v4874_v40  ;;  %v2977_v44 = vld [vmem:[%s4566_s15 + $0xad] sm:$0xff] }
 0x206   : > { %v1357_v43 = vpop.f32.mrf.mxu2  ;;  %v2506_v12 = vadd.f32 %v5337_v10, %v2124_v5 }
 0x207   : > { %v1395_v59 = vadd.f32 %v1357_v43, %v1013_v63  ;;  %v1739_v56 = vpop.f32.mrf.mxu3 }
 0x208   : > { %v5412_v50 = vpop.f32.mrf.mxu1 }
 0x209   : > { %v5415_v49 = vadd.f32 %v1739_v56, %v1395_v59  ;;  %v5417_v62 = vpop.f32.mrf.mxu0  ;;  %v2218_v56 = vld [vmem:[%s4566_s15 + $0xc4] sm:$0xff] }
 0x20a   : > { %6003 = vst [vmem:[#allocation45_spill] sm:$0xff] %v5417_v62 }
 0x20b   : > { %6002 = vst [vmem:[#allocation44_spill] sm:$0xff] %v5415_v49  ;;  %4231 = vmatmul.msk.f32.gmra.mxu1 %vm358_vm1, %v2217_v25  ;;  %4264 = vmatmul.msk.f32.gmra.mxu2 %vm358_vm1, %v2214_v54  ;;  %v3358_v54 = vld [vmem:[%s4566_s15 + $0xa6] sm:$0xff]  ;;  %v3359_v49 = vld [vmem:[%s4566_s15 + $0xae] sm:$0xff] }
 0x20c   : > { %4302 = vmatmul.msk.f32.gmra.mxu3 %vm358_vm1, %v2976_v4  ;;  %4339 = vmatmul.msk.f32.gmra.mxu0 %vm358_vm1, %v3357_v3  ;;  %v2125_v4 = vadd.f32 %v4891_v61, %v4889_v60  ;;  %v2978_v61 = vld [vmem:[%s4566_s15 + $0xb5] sm:$0xff] }
 0x20e   : > { %v2780_v39 = vpop.f32.mrf.mxu2  ;;  %v2507_v10 = vadd.f32 %v5352_v9, %v2125_v4 }
 0x20f   : > { %v2888_v63 = vadd.f32 %v2780_v39, %v2506_v12  ;;  %v3162_v43 = vpop.f32.mrf.mxu3 }
 0x210   : > { %v5428_v59 = vpop.f32.mrf.mxu1 }
 0x211   : > { %v5431_v62 = vadd.f32 %v3162_v43, %v2888_v63  ;;  %v5433_v40 = vpop.f32.mrf.mxu0  ;;  %v2219_v63 = vld [vmem:[%s4566_s15 + $0xcc] sm:$0xff] }
 0x212   : > { %6005 = vst [vmem:[#allocation47_spill] sm:$0xff] %v5433_v40 }
 0x213   : > { %6004 = vst [vmem:[#allocation46_spill] sm:$0xff] %v5431_v62  ;;  %4232 = vmatmul.msk.f32.gmra.mxu1 %vm358_vm1, %v2218_v56  ;;  %4265 = vmatmul.msk.f32.gmra.mxu2 %vm358_vm1, %v2215_v23  ;;  %v2126_v23 = vadd.f32 %v4906_v32, %v4904_v30  ;;  %v6016_v62 = vld [vmem:[#allocation14_spill] sm:$0xff] }
 0x214   : > { %4303 = vmatmul.msk.f32.gmra.mxu3 %vm358_vm1, %v2977_v44  ;;  %4340 = vmatmul.msk.f32.gmra.mxu0 %vm358_vm1, %v3358_v54  ;;  %v2132_v54 = vadd.f32 %v4996_v17, %v4994_v37 }
 0x215   : > { %v2508_v9 = vadd.f32 %v5367_v47, %v2126_v23  ;;  %v2127_v47 = vadd.f32 %v4921_v53, %v4919_v51  ;;  %v2980_v53 = vld [vmem:[%s4566_s15 + $0xc5] sm:$0xff] }
 0x216   : > { %v2783_v3 = vpop.f32.mrf.mxu2 }
 0x217   : > { %v2889_v5 = vadd.f32 %v2783_v3, %v2507_v10  ;;  %v3165_v12 = vpop.f32.mrf.mxu3  ;;  %v2509_v37 = vadd.f32 %v5382_v46, %v2127_v47  ;;  %v2222_v47 = vld [vmem:[%s4566_s15 + $0xe4] sm:$0xff] }
 0x218   : > { %v5444_v39 = vpop.f32.mrf.mxu1 }
 0x219   : > { %v5447_v43 = vadd.f32 %v3165_v12, %v2889_v5  ;;  %v5449_v60 = vpop.f32.mrf.mxu0  ;;  %v2220_v5 = vld [vmem:[%s4566_s15 + $0xd4] sm:$0xff]  ;;  %v2979_v12 = vld [vmem:[%s4566_s15 + $0xbd] sm:$0xff] }
 0x21a   : > { %6007 = vst [vmem:[#allocation49_spill] sm:$0xff] %v5449_v60 }
 0x21b   : > { %6006 = vst [vmem:[#allocation48_spill] sm:$0xff] %v5447_v43  ;;  %4233 = vmatmul.msk.f32.gmra.mxu1 %vm358_vm1, %v2219_v63  ;;  %4266 = vmatmul.msk.f32.gmra.mxu2 %vm358_vm1, %v2216_v57 }
 0x21c   : > { %4304 = vmatmul.msk.f32.gmra.mxu3 %vm358_vm1, %v2978_v61  ;;  %4341 = vmatmul.msk.f32.gmra.mxu0 %vm358_vm1, %v3359_v49  ;;  %v3360_v49 = vld [vmem:[%s4566_s15 + $0xb6] sm:$0xff] }
 0x21e   : > { %v2786_v44 = vpop.f32.mrf.mxu2 }
 0x21f   : > { %v2890_v4 = vadd.f32 %v2786_v44, %v2508_v9  ;;  %v3168_v10 = vpop.f32.mrf.mxu3  ;;  %v2221_v44 = vld [vmem:[%s4566_s15 + $0xdc] sm:$0xff] }
 0x220   : > { %v2422_v3 = vpop.f32.mrf.mxu1 }
 0x221   : > { %v5463_v30 = vadd.f32 %v2422_v3, %v2132_v54  ;;  %v5465_v32 = vadd.f32 %v3168_v10, %v2890_v4  ;;  %v5467_v57 = vpop.f32.mrf.mxu0  ;;  %v2128_v4 = vadd.f32 %v4936_v26, %v4934_v18  ;;  %v2981_v26 = vld [vmem:[%s4566_s15 + $0xcd] sm:$0xff] }
 0x222   : > { %6009 = vst [vmem:[#allocation51_spill] sm:$0xff] %v5467_v57  ;;  %v3372_v57 = vld [vmem:[%s4566_s15 + $0x116] sm:$0xff] }
 0x223   : > { %6008 = vst [vmem:[#allocation50_spill] sm:$0xff] %v5465_v32  ;;  %4234 = vmatmul.msk.f32.gmra.mxu1 %vm358_vm1, %v2220_v5  ;;  %4267 = vmatmul.msk.f32.gmra.mxu2 %vm358_vm1, %v2217_v25  ;;  %v3361_v25 = vld [vmem:[%s4566_s15 + $0xbe] sm:$0xff]  ;;  %v2510_v46 = vadd.f32 %v5397_v0, %v2128_v4  ;;  %v2223_v4 = vld [vmem:[%s4566_s15 + $0xec] sm:$0xff] }
 0x224   : > { %4305 = vmatmul.msk.f32.gmra.mxu3 %vm358_vm1, %v2979_v12  ;;  %4342 = vmatmul.msk.f32.gmra.mxu0 %vm358_vm1, %v3360_v49  ;;  %v6017_v32 = vld [vmem:[#allocation11_spill] sm:$0xff] }
 0x226   : > { %v2789_v17 = vpop.f32.mrf.mxu2 }
 0x227   : > { %v2891_v61 = vadd.f32 %v2789_v17, %v2509_v37  ;;  %v3171_v23 = vpop.f32.mrf.mxu3  ;;  %v2129_v17 = vadd.f32 %v4951_v58, %v4949_v36  ;;  %v2982_v58 = vld [vmem:[%s4566_s15 + $0xd5] sm:$0xff] }
 0x228   : > { %v5478_v9 = vpop.f32.mrf.mxu1 }
 0x229   : > { %v5481_v54 = vadd.f32 %v3171_v23, %v2891_v61  ;;  %v5483_v51 = vpop.f32.mrf.mxu0  ;;  %v2511_v0 = vadd.f32 %v5412_v50, %v2129_v17  ;;  %v2224_v17 = vld [vmem:[%s4566_s15 + $0xf4] sm:$0xff] }
 0x22b   : > { %4235 = vmatmul.msk.f32.gmra.mxu1 %vm358_vm1, %v2221_v44  ;;  %4268 = vmatmul.msk.f32.gmra.mxu2 %vm358_vm1, %v2218_v56  ;;  %v3362_v56 = vld [vmem:[%s4566_s15 + $0xc6] sm:$0xff] }
 0x22c   : > { %4306 = vmatmul.msk.f32.gmra.mxu3 %vm358_vm1, %v2980_v53  ;;  %4343 = vmatmul.msk.f32.gmra.mxu0 %vm358_vm1, %v3361_v25 }
 0x22e   : > { %v2792_v10 = vpop.f32.mrf.mxu2 }
 0x22f   : > { %v2892_v3 = vadd.f32 %v2792_v10, %v2510_v46  ;;  %v3174_v12 = vpop.f32.mrf.mxu3  ;;  %v2130_v10 = vadd.f32 %v4966_v31, %v4964_v33  ;;  %v2983_v31 = vld [vmem:[%s4566_s15 + $0xdd] sm:$0xff] }
 0x230   : > { %v5494_v49 = vpop.f32.mrf.mxu1 }
 0x231   : > { %v5497_v37 = vadd.f32 %v3174_v12, %v2892_v3  ;;  %v5499_v18 = vpop.f32.mrf.mxu0  ;;  %v2512_v50 = vadd.f32 %v5428_v59, %v2130_v10  ;;  %v2225_v10 = vld [vmem:[%s4566_s15 + $0xfc] sm:$0xff] }
 0x233   : > { %4236 = vmatmul.msk.f32.gmra.mxu1 %vm358_vm1, %v2222_v47  ;;  %4269 = vmatmul.msk.f32.gmra.mxu2 %vm358_vm1, %v2219_v63  ;;  %v3363_v63 = vld [vmem:[%s4566_s15 + $0xce] sm:$0xff] }
 0x234   : > { %4307 = vmatmul.msk.f32.gmra.mxu3 %vm358_vm1, %v2981_v26  ;;  %4344 = vmatmul.msk.f32.gmra.mxu0 %vm358_vm1, %v3362_v56 }
 0x236   : > { %v2795_v61 = vpop.f32.mrf.mxu2 }
 0x237   : > { %v2893_v23 = vadd.f32 %v2795_v61, %v2511_v0  ;;  %v3177_v53 = vpop.f32.mrf.mxu3  ;;  %v2131_v61 = vadd.f32 %v4981_v16, %v4979_v38  ;;  %v2984_v16 = vld [vmem:[%s4566_s15 + $0xe5] sm:$0xff] }
 0x238   : > { %v5510_v25 = vpop.f32.mrf.mxu1 }
 0x239   : > { %v5513_v46 = vadd.f32 %v3177_v53, %v2893_v23  ;;  %v5515_v36 = vpop.f32.mrf.mxu0  ;;  %v2513_v59 = vadd.f32 %v5444_v39, %v2131_v61 }
 0x23b   : > { %4237 = vmatmul.msk.f32.gmra.mxu1 %vm358_vm1, %v2223_v4  ;;  %4270 = vmatmul.msk.f32.gmra.mxu2 %vm358_vm1, %v2220_v5  ;;  %v3364_v5 = vld [vmem:[%s4566_s15 + $0xd6] sm:$0xff] }
 0x23c   : > { %4308 = vmatmul.msk.f32.gmra.mxu3 %vm358_vm1, %v2982_v58  ;;  %4345 = vmatmul.msk.f32.gmra.mxu0 %vm358_vm1, %v3363_v63 }
 0x23e   : > { %v2798_v3 = vpop.f32.mrf.mxu2 }
 0x23f   : > { %v2894_v12 = vadd.f32 %v2798_v3, %v2512_v50  ;;  %v3180_v26 = vpop.f32.mrf.mxu3 }
 0x240   : > { %v5526_v56 = vpop.f32.mrf.mxu1 }
 0x241   : > { %v5529_v0 = vadd.f32 %v3180_v26, %v2894_v12  ;;  %v5531_v33 = vpop.f32.mrf.mxu0 }
 0x243   : > { %4238 = vmatmul.msk.f32.gmra.mxu1 %vm358_vm1, %v2224_v17  ;;  %4271 = vmatmul.msk.f32.gmra.mxu2 %vm358_vm1, %v2221_v44  ;;  %v3365_v44 = vld [vmem:[%s4566_s15 + $0xde] sm:$0xff] }
 0x244   : > { %4309 = vmatmul.msk.f32.gmra.mxu3 %vm358_vm1, %v2983_v31  ;;  %4346 = vmatmul.msk.f32.gmra.mxu0 %vm358_vm1, %v3364_v5  ;;  %v2226_v31 = vld [vmem:[%s4566_s15 + $0x104] sm:$0xff] }
 0x246   : > { %v2801_v23 = vpop.f32.mrf.mxu2 }
 0x247   : > { %v2895_v53 = vadd.f32 %v2801_v23, %v2513_v59  ;;  %v3183_v58 = vpop.f32.mrf.mxu3  ;;  %v2985_v59 = vld [vmem:[%s4566_s15 + $0xed] sm:$0xff] }
 0x248   : > { %v5542_v63 = vpop.f32.mrf.mxu1  ;;  %v3366_v23 = vld [vmem:[%s4566_s15 + $0xe6] sm:$0xff] }
 0x249   : > { %v5545_v50 = vadd.f32 %v3183_v58, %v2895_v53  ;;  %v5547_v38 = vpop.f32.mrf.mxu0 }
 0x24b   : > { %4239 = vmatmul.msk.f32.gmra.mxu1 %vm358_vm1, %v2225_v10  ;;  %4272 = vmatmul.msk.f32.gmra.mxu2 %vm358_vm1, %v2222_v47 }
 0x24c   : > { %4310 = vmatmul.msk.f32.gmra.mxu3 %vm358_vm1, %v2984_v16  ;;  %4347 = vmatmul.msk.f32.gmra.mxu0 %vm358_vm1, %v3365_v44  ;;  %v2227_v16 = vld [vmem:[%s4566_s15 + $0x10c] sm:$0xff] }
 0x24e   : > { %v2804_v39 = vpop.f32.mrf.mxu2 }
 0x24f   : > { %v2896_v3 = vadd.f32 %v2804_v39, %v5463_v30  ;;  %v3186_v12 = vpop.f32.mrf.mxu3  ;;  %v2986_v39 = vld [vmem:[%s4566_s15 + $0xf5] sm:$0xff] }
 0x250   : > { %v5556_v26 = vpop.f32.mrf.mxu1 }
 0x251   : > { %v3278_v5 = vadd.f32 %v3186_v12, %v2896_v3  ;;  %v3568_v61 = vpop.f32.mrf.mxu0  ;;  %v3367_v3 = vld [vmem:[%s4566_s15 + $0xee] sm:$0xff]  ;;  %v2140_v12 = vadd.f32 %v5132_v52, %v5130_v8  ;;  %v2141_v52 = vadd.f32 %v5147_v2, %v5145_v45  ;;  %v2142_v2 = vadd.f32 %v5162_v29, %v5160_v15 }
 0x252   : > { %v2143_v29 = vadd.f32 %v5177_v6, %v5175_v22  ;;  %v2138_v22 = vadd.f32 %v5090_v24, %v5088_v1  ;;  %v2991_v1 = vld [vmem:[%s4566_s15 + $0x11d] sm:$0xff] }
 0x253   : > { %v5561_v53 = vadd.f32 %v3568_v61, %v3278_v5  ;;  %4240 = vmatmul.msk.f32.gmra.mxu1 %vm358_vm1, %v2226_v31  ;;  %4273 = vmatmul.msk.f32.gmra.mxu2 %vm358_vm1, %v2223_v4 }
 0x254   : > { %4311 = vmatmul.msk.f32.gmra.mxu3 %vm358_vm1, %v2985_v59  ;;  %4348 = vmatmul.msk.f32.gmra.mxu0 %vm358_vm1, %v3366_v23  ;;  %v2228_v59 = vld [vmem:[%s4566_s15 + $0x114] sm:$0xff]  ;;  %v2520_v14 = vadd.f32 %v5556_v26, %v2138_v22 }
 0x256   : > { %v5567_v30 = vpop.f32.mrf.mxu2 }
 0x257   : > { %v5569_v47 = vpop.f32.mrf.mxu3 }
 0x258   : > { %v5571_v58 = vpop.f32.mrf.mxu1 }
 0x259   : > { %v5574_v44 = vpop.f32.mrf.mxu0 }
 0x25b   : > { %4241 = vmatmul.msk.f32.gmra.mxu1 %vm358_vm1, %v2227_v16  ;;  %4274 = vmatmul.msk.f32.gmra.mxu2 %vm358_vm1, %v2224_v17  ;;  %v2987_v17 = vld [vmem:[%s4566_s15 + $0xfd] sm:$0xff] }
 0x25c   : > { %4312 = vmatmul.msk.f32.gmra.mxu3 %vm358_vm1, %v2986_v39  ;;  %4349 = vmatmul.msk.f32.gmra.mxu0 %vm358_vm1, %v3367_v3  ;;  %v3368_v39 = vld [vmem:[%s4566_s15 + $0xf6] sm:$0xff] }
 0x25e   : > { %v5582_v4 = vpop.f32.mrf.mxu2 }
 0x25f   : > { %v5586_v5 = vpop.f32.mrf.mxu3 }
 0x260   : > { %v2446_v61 = vpop.f32.mrf.mxu1 }
 0x261   : > { %v5589_v23 = vadd.f32 %v2446_v61, %v2140_v12  ;;  %v5591_v35 = vpop.f32.mrf.mxu0  ;;  %v2229_v61 = vld [vmem:[%s4566_s15 + $0x11c] sm:$0xff] }
 0x263   : > { %4242 = vmatmul.msk.f32.gmra.mxu1 %vm358_vm1, %v2228_v59  ;;  %4275 = vmatmul.msk.f32.gmra.mxu2 %vm358_vm1, %v2225_v10  ;;  %v2988_v10 = vld [vmem:[%s4566_s15 + $0x105] sm:$0xff] }
 0x264   : > { %4313 = vmatmul.msk.f32.gmra.mxu3 %vm358_vm1, %v2987_v17  ;;  %4350 = vmatmul.msk.f32.gmra.mxu0 %vm358_vm1, %v3368_v39  ;;  %v3369_v17 = vld [vmem:[%s4566_s15 + $0xfe] sm:$0xff] }
 0x266   : > { %v5599_v8 = vpop.f32.mrf.mxu2 }
 0x267   : > { %v5603_v3 = vpop.f32.mrf.mxu3 }
 0x268   : > { %v2449_v12 = vpop.f32.mrf.mxu1 }
 0x269   : > { %v5606_v28 = vadd.f32 %v2449_v12, %v2141_v52  ;;  %v5608_v42 = vpop.f32.mrf.mxu0  ;;  %v5619_v12 = vld [vmem:[%s4566_s15 + $0x124] sm:$0xff] }
 0x26b   : > { %4243 = vmatmul.msk.f32.gmra.mxu1 %vm358_vm1, %v2229_v61  ;;  %4276 = vmatmul.msk.f32.gmra.mxu2 %vm358_vm1, %v2226_v31  ;;  %v2989_v31 = vld [vmem:[%s4566_s15 + $0x10d] sm:$0xff] }
 0x26c   : > { %4314 = vmatmul.msk.f32.gmra.mxu3 %vm358_vm1, %v2988_v10  ;;  %4351 = vmatmul.msk.f32.gmra.mxu0 %vm358_vm1, %v3369_v17 }
 0x26e   : > { %v2816_v45 = vpop.f32.mrf.mxu2 }
 0x26f   : > { %v3198_v39 = vpop.f32.mrf.mxu3 }
 0x270   : > { %v2452_v52 = vpop.f32.mrf.mxu1 }
 0x271   : > { %v5621_v21 = vadd.f32 %v2452_v52, %v2142_v2  ;;  %v5623_v19 = vpop.f32.mrf.mxu0  ;;  %v5635_v2 = vld [vmem:[%s4566_s15 + $0x12c] sm:$0xff] }
 0x273   : > { %6010 = vst [vmem:[#allocation52_spill] sm:$0xff] %v5621_v21  ;;  %4244 = vmatmul.msk.f32.gmra.mxu1 %vm358_vm1, %v5619_v12  ;;  %4277 = vmatmul.msk.f32.gmra.mxu2 %vm358_vm1, %v2227_v16  ;;  %v6013_v16 = vld [vmem:[#allocation16_spill] sm:$0xff]  ;;  %v6019_v21 = vld [vmem:[#allocation17_spill] sm:$0xff] }
 0x274   : > { %4315 = vmatmul.msk.f32.gmra.mxu3 %vm358_vm1, %v2989_v31  ;;  %4352 = vmatmul.msk.f32.gmra.mxu0 %vm358_vm1, %v3370_v11  ;;  %v6012_v11 = vld [vmem:[#allocation15_spill] sm:$0xff] }
 0x275   : > { %v2137_v31 = vadd.f32 %v6013_v16, %v6012_v11  ;;  %v6018_v11 = vld [vmem:[#allocation12_spill] sm:$0xff] }
 0x276   : > { %v2819_v15 = vpop.f32.mrf.mxu2  ;;  %v2135_v16 = vadd.f32 %v6018_v11, %v6017_v32 }
 0x277   : > { %v3201_v10 = vpop.f32.mrf.mxu3 }
 0x278   : > { %v2455_v17 = vpop.f32.mrf.mxu1 }
 0x279   : > { %v5637_v52 = vadd.f32 %v2455_v17, %v2143_v29  ;;  %v3583_v55 = vpop.f32.mrf.mxu0  ;;  %v6014_v29 = vld [vmem:[#allocation19_spill] sm:$0xff] }
 0x27a   : > { %v2144_v17 = vadd.f32 %v6014_v29, %v5190_v13  ;;  %v6020_v13 = vld [vmem:[#allocation18_spill] sm:$0xff] }
 0x27b   : > { %6011 = vst [vmem:[#allocation53_spill] sm:$0xff] %v5637_v52  ;;  %4245 = vmatmul.msk.f32.gmra.mxu1 %vm358_vm1, %v5635_v2  ;;  %4278 = vmatmul.msk.f32.gmra.mxu2 %vm358_vm1, %v2228_v59  ;;  %v6015_v59 = vld [vmem:[#allocation13_spill] sm:$0xff]  ;;  %v2139_v29 = vadd.f32 %v6020_v13, %v6019_v21  ;;  %v6024_v21 = vld [vmem:[#allocation8_spill] sm:$0xff] }
 0x27c   : > { %4316 = vmatmul.msk.f32.gmra.mxu3 %vm358_vm1, %v2990_v7  ;;  %4353 = vmatmul.msk.f32.gmra.mxu0 %vm358_vm1, %v3371_v48  ;;  %v2136_v60 = vadd.f32 %v6016_v62, %v6015_v59  ;;  %v2519_v7 = vadd.f32 %v5542_v63, %v2137_v31  ;;  %v6021_v62 = vld [vmem:[#allocation9_spill] sm:$0xff]  ;;  %v6022_v59 = vld [vmem:[#allocation10_spill] sm:$0xff]  ;;  %v6023_v31 = vld [vmem:[#allocation7_spill] sm:$0xff] }
 0x27d   : > { %v2134_v63 = vadd.f32 %v6022_v59, %v6021_v62  ;;  %v6026_v62 = vld [vmem:[#allocation21_spill] sm:$0xff] }
 0x27e   : > { %v2822_v6 = vpop.f32.mrf.mxu2  ;;  %v2518_v26 = vadd.f32 %v5526_v56, %v2136_v60  ;;  %v2901_v22 = vadd.f32 %v2819_v15, %v2519_v7 }
 0x27f   : > { %v3204_v52 = vpop.f32.mrf.mxu3  ;;  %v2902_v48 = vadd.f32 %v2822_v6, %v2520_v14  ;;  %v2517_v14 = vadd.f32 %v5510_v25, %v2135_v16  ;;  %v2516_v60 = vadd.f32 %v5494_v49, %v2134_v63 }
 0x280   : > { %v2458_v40 = vpop.f32.mrf.mxu1  ;;  %v2900_v32 = vadd.f32 %v2816_v45, %v2518_v26  ;;  %v3373_v26 = vld [vmem:[%s4566_s15 + $0x11e] sm:$0xff] }
 0x281   : > { %v5656_v43 = vadd.f32 %v2458_v40, %v2144_v17  ;;  %v3586_v24 = vpop.f32.mrf.mxu0  ;;  %v2521_v40 = vadd.f32 %v5571_v58, %v2139_v29  ;;  %v3284_v6 = vadd.f32 %v3204_v52, %v2902_v48  ;;  %v2133_v17 = vadd.f32 %v6024_v21, %v6023_v31  ;;  %v2992_v29 = vld [vmem:[%s4566_s15 + $0x125] sm:$0xff] }
 0x282   : > { %v2899_v7 = vadd.f32 %v5599_v8, %v2517_v14  ;;  %v2898_v45 = vadd.f32 %v5582_v4, %v2516_v60  ;;  %v3282_v48 = vadd.f32 %v3198_v39, %v2900_v32  ;;  %v5688_v8 = vld [vmem:[%s5958_s2] ss:$0 sm:$0xff]  ;;  %v3374_v60 = vld [vmem:[%s4566_s15 + $0x126] sm:$0xff] }
 0x283   : > { %4279 = vmatmul.msk.f32.gmra.mxu2 %vm358_vm1, %v2229_v61  ;;  %v6025_v61 = vld [vmem:[#allocation20_spill] sm:$0xff]  ;;  %v2515_v58 = vadd.f32 %v5478_v9, %v2133_v17  ;;  %v3666_v11 = vadd.f32 %v3586_v24, %v3284_v6 }
 0x284   : > { %4317 = vmatmul.msk.f32.gmra.mxu3 %vm358_vm1, %v2991_v1  ;;  %4354 = vmatmul.msk.f32.gmra.mxu0 %vm358_vm1, %v3372_v57  ;;  %v2145_v15 = vadd.f32 %v6025_v61, %v5205_v20  ;;  %v3283_v57 = vadd.f32 %v3201_v10, %v2901_v22  ;;  %v3281_v9 = vadd.f32 %v5603_v3, %v2899_v7  ;;  %v2993_v17 = vld [vmem:[%s4566_s15 + $0x12d] sm:$0xff] }
 0x285   : > { %v2897_v20 = vadd.f32 %v5567_v30, %v2515_v58  ;;  %v3280_v39 = vadd.f32 %v5586_v5, %v2898_v45  ;;  %v3664_v30 = vadd.f32 %v5623_v19, %v3282_v48  ;;  %v3778_v24 = vadd.f32 %v5688_v8, %v3666_v11  ;;  %v2612_v11 = vld [vmem:[%s4566_s15 + $0x134] sm:$0xff] }
 0x286   : > { %v2825_v56 = vpop.f32.mrf.mxu2  ;;  %v3665_v10 = vadd.f32 %v3583_v55, %v3283_v57  ;;  %v2146_v3 = vadd.f32 %v6026_v62, %v5220_v27  ;;  %v3663_v5 = vadd.f32 %v5608_v42, %v3281_v9 }
 0x287   : > { %v2903_v1 = vadd.f32 %v2825_v56, %v2521_v40  ;;  %v3207_v25 = vpop.f32.mrf.mxu3  ;;  %v3279_v55 = vadd.f32 %v5569_v47, %v2897_v20  ;;  %v3662_v40 = vadd.f32 %v5591_v35, %v3280_v39  ;;  %v3776_v6 = vadd.f32 %v5688_v8, %v3664_v30 }
 0x288   : > { %v2461_v52 = vpop.f32.mrf.mxu1  ;;  %v3777_v59 = vadd.f32 %v5688_v8, %v3665_v10  ;;  %v3814_v31 = vmax.f32 %v3778_v24, 0.0  ;;  %v3775_v56 = vadd.f32 %v5688_v8, %v3663_v5  ;;  %v3655_v39 = vadd.f32 %v5483_v51, %v5481_v54  ;;  %v6029_v24 = vld [vmem:[#allocation52_spill] sm:$0xff]  ;;  %v2613_v5 = vld [vmem:[%s4566_s15 + $0x13c] sm:$0xff] }
 0x289   : > { %v5680_v16 = vadd.f32 %v2461_v52, %v2145_v15  ;;  %v3285_v49 = vadd.f32 %v3207_v25, %v2903_v1  ;;  %v3589_v13 = vpop.f32.mrf.mxu0  ;;  %v3661_v42 = vadd.f32 %v5574_v44, %v3279_v55  ;;  %v3774_v35 = vadd.f32 %v5688_v8, %v3662_v40  ;;  %v6027_v44 = vld [vmem:[#allocation22_spill] sm:$0xff]  ;;  %v6032_v40 = vld [vmem:[#allocation48_spill] sm:$0xff] }
 0x28a   : > { %v3813_v61 = vmax.f32 %v3777_v59, 0.0  ;;  %v3812_v15 = vmax.f32 %v3776_v6, 0.0  ;;  %v2147_v7 = vadd.f32 %v6027_v44, %v5235_v34  ;;  %v3659_v1 = vadd.f32 %v5547_v38, %v5545_v50  ;;  %v6036_v44 = vld [vmem:[#allocation53_spill] sm:$0xff] }
 0x28b   : > { %v3667_v4 = vadd.f32 %v3589_v13, %v3285_v49  ;;  %4280 = vmatmul.msk.f32.gmra.mxu2 %vm358_vm1, %v5619_v12  ;;  %v3811_v45 = vmax.f32 %v3775_v56, 0.0  ;;  %v3658_v52 = vadd.f32 %v5531_v33, %v5529_v0  ;;  %v3772_v34 = vadd.f32 %v5688_v8, %v5561_v53 }
 0x28c   : > { %4318 = vmatmul.msk.f32.gmra.mxu3 %vm358_vm1, %v2992_v29  ;;  %4355 = vmatmul.msk.f32.gmra.mxu0 %vm358_vm1, %v3373_v26  ;;  %v3810_v38 = vmax.f32 %v3774_v35, 0.0  ;;  %v2994_v29 = vld [vmem:[%s4566_s15 + $0x135] sm:$0xff]  ;;  %v3771_v20 = vadd.f32 %v5688_v8, %v3659_v1  ;;  %v3656_v33 = vadd.f32 %v5499_v18, %v5497_v37 }
 0x28d   : > { %v3779_v22 = vadd.f32 %v5688_v8, %v3667_v4  ;;  %v3375_v26 = vld [vmem:[%s4566_s15 + $0x12e] sm:$0xff]  ;;  %v3770_v53 = vadd.f32 %v5688_v8, %v3658_v52  ;;  %v6030_v18 = vld [vmem:[#allocation50_spill] sm:$0xff] }
 0x28e   : > { %v2828_v12 = vpop.f32.mrf.mxu2  ;;  %v3807_v37 = vmax.f32 %v3771_v20, 0.0  ;;  %v3377_v52 = vld [vmem:[%s4566_s15 + $0x13e] sm:$0xff] }
 0x28f   : > { %v3815_v63 = vmax.f32 %v3779_v22, 0.0  ;;  %v2904_v14 = vadd.f32 %v2828_v12, %v5589_v23  ;;  %v3210_v19 = vpop.f32.mrf.mxu3  ;;  %v3806_v51 = vmax.f32 %v3770_v53, 0.0 }
 0x290   : > { %v2464_v32 = vpop.f32.mrf.mxu1 }
 0x291   : > { %v5707_v27 = vadd.f32 %v2464_v32, %v2146_v3  ;;  %v3286_v21 = vadd.f32 %v3210_v19, %v2904_v14  ;;  %3846 = vmatpush.msrb.mxu1 %v3815_v63  ;;  %v3592_v47 = vpop.f32.mrf.mxu0  ;;  %v6031_v3 = vld [vmem:[#allocation51_spill] sm:$0xff]  ;;  %v3376_v19 = vld [vmem:[%s4566_s15 + $0x136] sm:$0xff] }
 0x292   : > { %v3654_v55 = vadd.f32 %v6031_v3, %v6030_v18  ;;  %v2995_v14 = vld [vmem:[%s4566_s15 + $0x13d] sm:$0xff]  ;;  %v6033_v32 = vld [vmem:[#allocation49_spill] sm:$0xff]  ;;  %s4423_s15 = scalar_lea.hbm %s4422_s19, 1 }
 0x293   : > { %v5713_v23 = vadd.f32 %v3592_v47, %v3286_v21  ;;  %4281 = vmatmul.msk.f32.gmra.mxu2 %vm358_vm1, %v5635_v2  ;;  %3847 = vmatpush.msrb.mxu1 %v3814_v31  ;;  %v3773_v2 = vadd.f32 %v5688_v8, %v3661_v42  ;;  %v3653_v6 = vadd.f32 %v6033_v32, %v6032_v40  ;;  %p4424_p11 = scmp.ne.s32.totalorder %s4422_s19, %s4423_s15  ;;  %p4429_p1 = scmp.lt.s32.totalorder %s4427_s26, %s4423_s15 }
 0x294   : > { %4319 = vmatmul.msk.f32.gmra.mxu3 %vm358_vm1, %v2993_v17  ;;  %4356 = vmatmul.msk.f32.gmra.mxu0 %vm358_vm1, %v3374_v60  ;;  %v3767_v31 = vadd.f32 %v5688_v8, %v3655_v39  ;;  %v6034_v17 = vld [vmem:[#allocation46_spill] sm:$0xff]  ;;  %v6035_v60 = vld [vmem:[#allocation47_spill] sm:$0xff]  ;;  %v3766_v56 = vadd.f32 %v5688_v8, %v3654_v55 }
 0x295   : > { %3848 = vmatpush.msrb.mxu1 %v3813_v61  ;;  %v3809_v0 = vmax.f32 %v3773_v2, 0.0  ;;  %v3652_v42 = vadd.f32 %v6035_v60, %v6034_v17  ;;  %p4425_p12 = pnand %p4424_p11, %p4544_p5  ;;  %p4430_p2 = por %p4429_p1, %p4428_p0 }
 0x296   : > { %v2831_v57 = vpop.f32.mrf.mxu2  ;;  %v3803_v1 = vmax.f32 %v3767_v31, 0.0 }
 0x297   : > { %v2905_v25 = vadd.f32 %v2831_v57, %v5606_v28  ;;  %3849 = vmatpush.msrb.mxu1 %v3812_v15  ;;  %v3213_v58 = vpop.f32.mrf.mxu3  ;;  %v3657_v28 = vadd.f32 %v5515_v36, %v5513_v46  ;;  %v3808_v46 = vmax.f32 %v3772_v34, 0.0  ;;  %v6028_v36 = vld [vmem:[#allocation23_spill] sm:$0xff]  ;;  %v3765_v15 = vadd.f32 %v5688_v8, %v3653_v6  ;;  %p4426_p13 = pneg %p4425_p12 }
 0x298   : > { %v2467_v48 = vpop.f32.mrf.mxu1  ;;  %v2148_v10 = vadd.f32 %v6028_v36, %v5250_v41  ;;  %v3768_v41 = vadd.f32 %v5688_v8, %v3656_v33  ;;  %v3764_v2 = vadd.f32 %v5688_v8, %v3652_v42 }
 0x299   : > { %v5731_v49 = vadd.f32 %v2467_v48, %v2147_v7  ;;  %v3287_v13 = vadd.f32 %v3213_v58, %v2905_v25  ;;  %3850 = vmatpush.msrb.mxu1 %v3811_v45  ;;  %v3595_v50 = vpop.f32.mrf.mxu0  ;;  %v3769_v30 = vadd.f32 %v5688_v8, %v3657_v28  ;;  %v3802_v45 = vmax.f32 %v3766_v56, 0.0  ;;  %p4431_p3 = pnand %p4430_p2, %p4426_p13 }
 0x29a   : > { %v3804_v61 = vmax.f32 %v3768_v41, 0.0  ;;  %v3800_v34 = vmax.f32 %v3764_v2, 0.0  ;;  %v6037_v2 = vld [vmem:[#allocation34_spill] sm:$0xff] }
 0x29b   : > { %v5738_v9 = vadd.f32 %v3595_v50, %v3287_v13  ;;  %4282 = vmatmul.msk.f32.gmra.mxu2 %vm358_vm1, %v2612_v11  ;;  %3851 = vmatpush.msrb.mxu1 %v3810_v38  ;;  %v3805_v47 = vmax.f32 %v3769_v30, 0.0  ;;  %v3801_v11 = vmax.f32 %v3765_v15, 0.0 }
 0x29c   : > { %4320 = vmatmul.msk.f32.gmra.mxu3 %vm358_vm1, %v2994_v29  ;;  %4357 = vmatmul.msk.f32.gmra.mxu0 %vm358_vm1, %v3375_v26 }
 0x29d   : > { %3852 = vmatpush.msrb.mxu1 %v3809_v0 }
 0x29e   : > { %v2834_v4 = vpop.f32.mrf.mxu2 }
 0x29f   : > { %v2906_v22 = vadd.f32 %v2834_v4, %v6029_v24  ;;  %3853 = vmatpush.msrb.mxu1 %v3808_v46  ;;  %v3216_v62 = vpop.f32.mrf.mxu3 }
 0x2a0   : > { %v2470_v12 = vpop.f32.mrf.mxu1 }
 0x2a1   : > { %v5756_v59 = vadd.f32 %v2470_v12, %v2148_v10  ;;  %v3288_v63 = vadd.f32 %v3216_v62, %v2906_v22  ;;  %3854 = vmatpush.msrb.mxu1 %v3807_v37  ;;  %v3598_v54 = vpop.f32.mrf.mxu0 }
 0x2a3   : > { %v5763_v21 = vadd.f32 %v3598_v54, %v3288_v63  ;;  %4283 = vmatmul.msk.f32.gmra.mxu2 %vm358_vm1, %v2613_v5  ;;  %3855 = vmatpush.msrb.mxu1 %v3806_v51 }
 0x2a4   : > { %4321 = vmatmul.msk.f32.gmra.mxu3 %vm358_vm1, %v2995_v14  ;;  %4358 = vmatmul.msk.f32.gmra.mxu0 %vm358_vm1, %v3376_v19 }
 0x2a5   : > { %3856 = vmatpush.msrb.mxu1 %v3805_v47 }
 0x2a6   : > { %v2837_v35 = vpop.f32.mrf.mxu2 }
 0x2a7   : > { %v2907_v7 = vadd.f32 %v2837_v35, %v6036_v44  ;;  %3857 = vmatpush.msrb.mxu1 %v3804_v61  ;;  %v3219_v57 = vpop.f32.mrf.mxu3 }
 0x2a8   : > { %v5784_v10 = vpop.f32.mrf.mxu1 }
 0x2a9   : > { %v3289_v25 = vadd.f32 %v3219_v57, %v2907_v7  ;;  %3858 = vmatpush.msrb.mxu1 %v3803_v1  ;;  %v3601_v58 = vpop.f32.mrf.mxu0 }
 0x2ab   : > { %v5775_v48 = vadd.f32 %v3601_v58, %v3289_v25  ;;  %3859 = vmatpush.msrb.mxu1 %v3802_v45  ;;  %v6038_v25 = vld [vmem:[#allocation35_spill] sm:$0xff] }
 0x2ac   : > { %4359 = vmatmul.msk.f32.gmra.mxu0 %vm358_vm1, %v3377_v52  ;;  %v2154_v58 = vadd.f32 %v6038_v25, %v6037_v2  ;;  %v6039_v52 = vld [vmem:[#allocation32_spill] sm:$0xff] }
 0x2ad   : > { %3860 = vmatpush.msrb.mxu1 %v3801_v11  ;;  %v6040_v11 = vld [vmem:[#allocation33_spill] sm:$0xff] }
 0x2ae   : > { %v2840_v13 = vpop.f32.mrf.mxu2 }
 0x2af   : > { %v2908_v50 = vadd.f32 %v2840_v13, %v5656_v43  ;;  %3861 = vmatpush.msrb.mxu1 %v3800_v34  ;;  %v3222_v38 = vpop.f32.mrf.mxu3  ;;  %v2153_v34 = vadd.f32 %v6040_v11, %v6039_v52 }
 0x2b1   : > { %v3290_v29 = vadd.f32 %v3222_v38, %v2908_v50  ;;  %v3604_v26 = vpop.f32.mrf.mxu0  ;;  %v6041_v38 = vld [vmem:[#allocation30_spill] sm:$0xff] }
 0x2b3   : > { %v5779_v28 = vadd.f32 %v3604_v26, %v3290_v29  ;;  %v6042_v29 = vld [vmem:[#allocation31_spill] sm:$0xff] }
 0x2b4   : > { %v2152_v26 = vadd.f32 %v6042_v29, %v6041_v38 }
 0x2b6   : > { %v2843_v20 = vpop.f32.mrf.mxu2 }
 0x2b7   : > { %v2909_v0 = vadd.f32 %v2843_v20, %v5680_v16  ;;  %v3225_v33 = vpop.f32.mrf.mxu3  ;;  %v2476_v16 = vpop.f32.mrf.mxu1 }
 0x2b9   : > { %v3291_v53 = vadd.f32 %v3225_v33, %v2909_v0  ;;  %v3607_v46 = vpop.f32.mrf.mxu0 }
 0x2bb   : > { %v5782_v36 = vadd.f32 %v3607_v46, %v3291_v53  ;;  %v6043_v53 = vld [vmem:[#allocation28_spill] sm:$0xff]  ;;  %v6044_v46 = vld [vmem:[#allocation29_spill] sm:$0xff] }
 0x2be   : > { %v2846_v4 = vpop.f32.mrf.mxu2 }
 0x2bf   : > { %v2910_v39 = vadd.f32 %v2846_v4, %v5707_v27  ;;  %v3228_v43 = vpop.f32.mrf.mxu3  ;;  %v2479_v51 = vpop.f32.mrf.mxu1  ;;  %v2151_v4 = vadd.f32 %v6044_v46, %v6043_v53 }
 0x2c1   : > { %v3292_v30 = vadd.f32 %v3228_v43, %v2910_v39  ;;  %v3610_v24 = vpop.f32.mrf.mxu0  ;;  %v6045_v39 = vld [vmem:[#allocation36_spill] sm:$0xff]  ;;  %v6046_v43 = vld [vmem:[#allocation37_spill] sm:$0xff] }
 0x2c3   : > { %v5787_v22 = vadd.f32 %v3610_v24, %v3292_v30  ;;  %v2155_v30 = vadd.f32 %v6046_v43, %v6045_v39 }
 0x2c6   : > { %v2849_v62 = vpop.f32.mrf.mxu2 }
 0x2c7   : > { %v2911_v37 = vadd.f32 %v2849_v62, %v5731_v49  ;;  %v3231_v18 = vpop.f32.mrf.mxu3  ;;  %v2482_v49 = vpop.f32.mrf.mxu1 }
 0x2c8   : > { %v2534_v24 = vadd.f32 %v2482_v49, %v2152_v26 }
 0x2c9   : > { %v3293_v3 = vadd.f32 %v3231_v18, %v2911_v37  ;;  %v3613_v55 = vpop.f32.mrf.mxu0  ;;  %v6047_v37 = vld [vmem:[#allocation26_spill] sm:$0xff]  ;;  %v6048_v18 = vld [vmem:[#allocation27_spill] sm:$0xff] }
 0x2cb   : > { %v5790_v12 = vadd.f32 %v3613_v55, %v3293_v3  ;;  %v2150_v3 = vadd.f32 %v6048_v18, %v6047_v37  ;;  %v3923_v37 = vld [vmem:[%s5959_s3 + $0x78] sm:$0xff]  ;;  %v3922_v18 = vld [vmem:[%s5959_s3 + $0x70] sm:$0xff] }
 0x2cc   : > { %3925 = vmatpush.msra.mxu1 %v3923_v37 }
 0x2cd   : > { %v2532_v25 = vadd.f32 %v2476_v16, %v2150_v3 }
 0x2ce   : > { %v2852_v5 = vpop.f32.mrf.mxu2  ;;  %3926 = vmatpush.msra.mxu1 %v3922_v18 }
 0x2cf   : > { %v2912_v41 = vadd.f32 %v2852_v5, %v5756_v59  ;;  %v3234_v63 = vpop.f32.mrf.mxu3  ;;  %v2485_v17 = vpop.f32.mrf.mxu1  ;;  %v2533_v5 = vadd.f32 %v2479_v51, %v2151_v4 }
 0x2d0   : > { %v2535_v20 = vadd.f32 %v2485_v17, %v2153_v34  ;;  %v6050_v17 = vld [vmem:[#allocation25_spill] sm:$0xff] }
 0x2d1   : > { %v3294_v54 = vadd.f32 %v3234_v63, %v2912_v41  ;;  %v3616_v27 = vpop.f32.mrf.mxu0 }
 0x2d3   : > { %v5793_v14 = vadd.f32 %v3616_v27, %v3294_v54  ;;  %v6049_v27 = vld [vmem:[#allocation24_spill] sm:$0xff] }
 0x2d5   : > { %v3788_v3 = vadd.f32 %v5688_v8, %v5793_v14  ;;  %v3920_v14 = vld [vmem:[%s5959_s3 + $0x60] sm:$0xff] }
 0x2d6   : > { %v2855_v19 = vpop.f32.mrf.mxu2 }
 0x2d7   : > { %v3237_v40 = vpop.f32.mrf.mxu3  ;;  %v2488_v35 = vpop.f32.mrf.mxu1 }
 0x2d8   : > { %v2536_v13 = vadd.f32 %v2488_v35, %v2154_v58  ;;  %v2149_v35 = vadd.f32 %v6050_v17, %v6049_v27  ;;  %v6051_v17 = vld [vmem:[#allocation42_spill] sm:$0xff] }
 0x2d9   : > { %v5795_v32 = vpop.f32.mrf.mxu0 }
 0x2da   : > { %v2531_v49 = vadd.f32 %v5784_v10, %v2149_v35  ;;  %v6052_v35 = vld [vmem:[#allocation43_spill] sm:$0xff] }
 0x2dc   : > { %v2913_v51 = vadd.f32 %v2855_v19, %v2531_v49 }
 0x2de   : > { %v2858_v6 = vpop.f32.mrf.mxu2  ;;  %v3295_v53 = vadd.f32 %v3237_v40, %v2913_v51 }
 0x2df   : > { %v3240_v31 = vpop.f32.mrf.mxu3  ;;  %v2491_v1 = vpop.f32.mrf.mxu1 }
 0x2e0   : > { %v2537_v41 = vadd.f32 %v2491_v1, %v2155_v30 }
 0x2e1   : > { %v3622_v47 = vpop.f32.mrf.mxu0 }
 0x2e6   : > { %v2861_v60 = vpop.f32.mrf.mxu2 }
 0x2e7   : > { %v3243_v42 = vpop.f32.mrf.mxu3  ;;  %v5809_v55 = vpop.f32.mrf.mxu1  ;;  %v2915_v58 = vadd.f32 %v2861_v60, %v2533_v5 }
 0x2e9   : > { %v3625_v56 = vpop.f32.mrf.mxu0  ;;  %v3297_v1 = vadd.f32 %v3243_v42, %v2915_v58  ;;  %v3824_v58 = vmax.f32 %v3788_v3, 0.0 }
 0x2eb   : > { %v3679_v10 = vadd.f32 %v3625_v56, %v3297_v1  ;;  %v3918_v1 = vld [vmem:[%s5959_s3 + $0x50] sm:$0xff] }
 0x2ed   : > { %v3791_v46 = vadd.f32 %v5688_v8, %v3679_v10 }
 0x2ee   : > { %v2864_v61 = vpop.f32.mrf.mxu2 }
 0x2ef   : > { %v3246_v59 = vpop.f32.mrf.mxu3  ;;  %v2916_v63 = vadd.f32 %v2864_v61, %v2534_v24  ;;  %v2497_v60 = vpop.f32.mrf.mxu1  ;;  %v5831_v24 = vld [vmem:[%s5961_s5] sm:$0x7] }
 0x2f1   : > { %v3628_v15 = vpop.f32.mrf.mxu0  ;;  %v3298_v34 = vadd.f32 %v3246_v59, %v2916_v63  ;;  %v3921_v63 = vld [vmem:[%s5959_s3 + $0x68] sm:$0xff] }
 0x2f2   : > { %3927 = vmatpush.msra.mxu1 %v3921_v63 }
 0x2f4   : > { %3928 = vmatpush.msra.mxu1 %v3920_v14 }
 0x2f6   : > { %v2867_v44 = vpop.f32.mrf.mxu2 }
 0x2f7   : > { %v3249_v7 = vpop.f32.mrf.mxu3  ;;  %v2917_v62 = vadd.f32 %v2867_v44, %v2535_v20  ;;  %v2914_v44 = vadd.f32 %v2858_v6, %v2532_v25  ;;  %v3680_v20 = vadd.f32 %v3628_v15, %v3298_v34  ;;  %v3677_v15 = vadd.f32 %v5795_v32, %v3295_v53  ;;  %v2500_v32 = vpop.f32.mrf.mxu1 }
 0x2f8   : > { %v3786_v25 = vadd.f32 %v5688_v8, %v5787_v22  ;;  %v6055_v22 = vld [vmem:[#allocation38_spill] sm:$0xff] }
 0x2f9   : > { %v3631_v57 = vpop.f32.mrf.mxu0  ;;  %v3296_v26 = vadd.f32 %v3240_v31, %v2914_v44  ;;  %v3792_v42 = vadd.f32 %v5688_v8, %v3680_v20  ;;  %v3789_v43 = vadd.f32 %v5688_v8, %v3677_v15  ;;  %v3785_v44 = vadd.f32 %v5688_v8, %v5782_v36 }
 0x2fb   : > { %v3678_v19 = vadd.f32 %v3622_v47, %v3296_v26  ;;  %v3828_v56 = vmax.f32 %v3792_v42, 0.0  ;;  %v3827_v47 = vmax.f32 %v3791_v46, 0.0  ;;  %v3825_v27 = vmax.f32 %v3789_v43, 0.0 }
 0x2fd   : > { %v3790_v40 = vadd.f32 %v5688_v8, %v3678_v19  ;;  %v3821_v19 = vmax.f32 %v3785_v44, 0.0 }
 0x2fe   : > { %v2870_v45 = vpop.f32.mrf.mxu2 }
 0x2ff   : > { %v3252_v50 = vpop.f32.mrf.mxu3  ;;  %v2918_v0 = vadd.f32 %v2870_v45, %v2536_v13  ;;  %v3299_v45 = vadd.f32 %v3249_v7, %v2917_v62  ;;  %v3838_v62 = vperm.slane %v5831_v24, 0  ;;  %v3826_v5 = vmax.f32 %v3790_v40, 0.0  ;;  %v2503_v10 = vpop.f32.mrf.mxu1 }
 0x301   : > { %v3634_v33 = vpop.f32.mrf.mxu0  ;;  %v3300_v54 = vadd.f32 %v3252_v50, %v2918_v0  ;;  %v3681_v61 = vadd.f32 %v3631_v57, %v3299_v45  ;;  %3862 = vmatmul.f32.vlgmr.msrb.gmra.mxu1 %v3838_v62 }
 0x303   : > { %v3682_v13 = vadd.f32 %v3634_v33, %v3300_v54  ;;  %v3793_v6 = vadd.f32 %v5688_v8, %v3681_v61  ;;  %v3787_v54 = vadd.f32 %v5688_v8, %v5790_v12  ;;  %v3919_v12 = vld [vmem:[%s5959_s3 + $0x58] sm:$0xff]  ;;  %v3784_v61 = vadd.f32 %v5688_v8, %v5779_v28 }
 0x304   : > { %3929 = vmatpush.msra.mxu1 %v3919_v12  ;;  %v3910_v12 = vld [vmem:[%s5959_s3 + $0x10] sm:$0xff] }
 0x305   : > { %v3794_v0 = vadd.f32 %v5688_v8, %v3682_v13  ;;  %v3829_v4 = vmax.f32 %v3793_v6, 0.0  ;;  %v3823_v34 = vmax.f32 %v3787_v54, 0.0  ;;  %v3917_v6 = vld [vmem:[%s5959_s3 + $0x48] sm:$0xff]  ;;  %v3820_v15 = vmax.f32 %v3784_v61, 0.0 }
 0x306   : > { %v2873_v2 = vpop.f32.mrf.mxu2  ;;  %3930 = vmatpush.msra.mxu1 %v3918_v1 }
 0x307   : > { %v2919_v52 = vadd.f32 %v2873_v2, %v2537_v41  ;;  %v3255_v11 = vpop.f32.mrf.mxu3  ;;  %v3830_v57 = vmax.f32 %v3794_v0, 0.0  ;;  %v2158_v2 = vadd.f32 %v6052_v35, %v6051_v17  ;;  %v6057_v0 = vld [vmem:[#allocation44_spill] sm:$0xff] }
 0x308   : > { %3931 = vmatpush.msra.mxu1 %v3917_v6 }
 0x309   : > { %v3301_v38 = vadd.f32 %v3255_v11, %v2919_v52  ;;  %v3637_v29 = vpop.f32.mrf.mxu0  ;;  %v6053_v52 = vld [vmem:[#allocation40_spill] sm:$0xff]  ;;  %v6054_v11 = vld [vmem:[#allocation41_spill] sm:$0xff]  ;;  %v2540_v13 = vadd.f32 %v2500_v32, %v2158_v2 }
 0x30a   : > { %v2157_v49 = vadd.f32 %v6054_v11, %v6053_v52  ;;  %v3909_v52 = vld [vmem:[%s5959_s3 + $0x8] sm:$0xff]  ;;  %v3908_v11 = vld [vmem:[%s5959_s3] sm:$0xff] }
 0x30b   : > { %v3683_v50 = vadd.f32 %v3637_v29, %v3301_v38  ;;  %v6056_v29 = vld [vmem:[#allocation39_spill] sm:$0xff] }
 0x30c   : > { %v2156_v51 = vadd.f32 %v6056_v29, %v6055_v22  ;;  %v2539_v26 = vadd.f32 %v2497_v60, %v2157_v49  ;;  %v3782_v60 = vadd.f32 %v5688_v8, %v5763_v21  ;;  %v3924_v29 = vld [vmem:[%s5960_s4] sm:$0x1] }
 0x30d   : > { %v3795_v16 = vadd.f32 %v5688_v8, %v3683_v50  ;;  %v3822_v50 = vmax.f32 %v3786_v25, 0.0  ;;  %v3840_v25 = vperm.slane %v5831_v24, 2 }
 0x30e   : > { %v5816_v7 = vpop.f32.mrf.mxu2  ;;  %v2538_v28 = vadd.f32 %v5809_v55, %v2156_v51  ;;  %v3915_v55 = vld [vmem:[%s5959_s3 + $0x38] sm:$0xff]  ;;  %v3818_v32 = vmax.f32 %v3782_v60, 0.0 }
 0x30f   : > { %v3831_v59 = vmax.f32 %v3795_v16, 0.0  ;;  %v5819_v33 = vpop.f32.mrf.mxu3  ;;  %v6058_v16 = vld [vmem:[#allocation45_spill] sm:$0xff] }
 0x310   : > { %v2159_v53 = vadd.f32 %v6058_v16, %v6057_v0 }
 0x311   : > { %3866 = vmatpush.msrb.mxu2 %v3831_v59  ;;  %v5822_v31 = vpop.f32.mrf.mxu0  ;;  %v3783_v59 = vadd.f32 %v5688_v8, %v5775_v48 }
 0x312   : > { %v2541_v46 = vadd.f32 %v2503_v10, %v2159_v53 }
 0x313   : > { %3867 = vmatpush.msrb.mxu2 %v3830_v57  ;;  %v3916_v57 = vld [vmem:[%s5959_s3 + $0x40] sm:$0xff]  ;;  %v3819_v21 = vmax.f32 %v3783_v59, 0.0 }
 0x314   : > { %3932 = vmatpush.msra.mxu1 %v3916_v57 }
 0x315   : > { %3868 = vmatpush.msrb.mxu2 %v3829_v4  ;;  %v2920_v4 = vadd.f32 %v5816_v7, %v2538_v28  ;;  %v3780_v7 = vadd.f32 %v5688_v8, %v5713_v23 }
 0x316   : > { %v2879_v39 = vpop.f32.mrf.mxu2  ;;  %3933 = vmatpush.msra.mxu1 %v3915_v55 }
 0x317   : > { %3869 = vmatpush.msrb.mxu2 %v3828_v56  ;;  %v3261_v30 = vpop.f32.mrf.mxu3  ;;  %v2921_v42 = vadd.f32 %v2879_v39, %v2539_v26  ;;  %v3781_v56 = vadd.f32 %v5688_v8, %v5738_v9  ;;  %v3302_v62 = vadd.f32 %v5819_v33, %v2920_v4  ;;  %v3816_v54 = vmax.f32 %v3780_v7, 0.0 }
 0x319   : > { %3870 = vmatpush.msrb.mxu2 %v3827_v47  ;;  %v5842_v41 = vpop.f32.mrf.mxu0  ;;  %v3303_v39 = vadd.f32 %v3261_v30, %v2921_v42  ;;  %v3839_v30 = vperm.slane %v5831_v24, 1  ;;  %v3911_v24 = vld [vmem:[%s5959_s3 + $0x18] sm:$0xff] }
 0x31b   : > { %3871 = vmatpush.msrb.mxu2 %v3826_v5  ;;  %v3817_v5 = vmax.f32 %v3781_v56, 0.0  ;;  %v3685_v9 = vadd.f32 %v5842_v41, %v3303_v39 }
 0x31d   : > { %3872 = vmatpush.msrb.mxu2 %v3825_v27  ;;  %v3684_v27 = vadd.f32 %v5822_v31, %v3302_v62  ;;  %v3797_v33 = vadd.f32 %v5688_v8, %v3685_v9  ;;  %v3914_v31 = vld [vmem:[%s5959_s3 + $0x30] sm:$0xff] }
 0x31e   : > { %v2882_v45 = vpop.f32.mrf.mxu2  ;;  %3934 = vmatpush.msra.mxu1 %v3914_v31 }
 0x31f   : > { %3873 = vmatpush.msrb.mxu2 %v3824_v58  ;;  %v3264_v38 = vpop.f32.mrf.mxu3  ;;  %v2922_v20 = vadd.f32 %v2882_v45, %v2540_v13  ;;  %v3796_v35 = vadd.f32 %v5688_v8, %v3684_v27  ;;  %v3833_v2 = vmax.f32 %v3797_v33, 0.0  ;;  %v3912_v45 = vld [vmem:[%s5959_s3 + $0x20] sm:$0xff] }
 0x321   : > { %3874 = vmatpush.msrb.mxu2 %v3823_v34  ;;  %v3646_v36 = vpop.f32.mrf.mxu0  ;;  %v3304_v40 = vadd.f32 %v3264_v38, %v2922_v20  ;;  %v3832_v58 = vmax.f32 %v3796_v35, 0.0 }
 0x323   : > { %3875 = vmatpush.msrb.mxu2 %v3822_v50  ;;  %v3686_v37 = vadd.f32 %v3646_v36, %v3304_v40 }
 0x325   : > { %3876 = vmatpush.msrb.mxu2 %v3821_v19  ;;  %v3798_v23 = vadd.f32 %v5688_v8, %v3686_v37 }
 0x326   : > { %v2885_v48 = vpop.f32.mrf.mxu2 }
 0x327   : > { %v2923_v43 = vadd.f32 %v2885_v48, %v2541_v46  ;;  %3877 = vmatpush.msrb.mxu2 %v3820_v15  ;;  %v3267_v47 = vpop.f32.mrf.mxu3  ;;  %v3834_v41 = vmax.f32 %v3798_v23, 0.0 }
 0x329   : > { %v3305_v18 = vadd.f32 %v3267_v47, %v2923_v43  ;;  %3878 = vmatpush.msrb.mxu2 %v3819_v21  ;;  %v3649_v3 = vpop.f32.mrf.mxu0 }
 0x32b   : > { %v3687_v63 = vadd.f32 %v3649_v3, %v3305_v18  ;;  %3879 = vmatpush.msrb.mxu2 %v3818_v32 }
 0x32d   : > { %v3799_v14 = vadd.f32 %v5688_v8, %v3687_v63  ;;  %3880 = vmatpush.msrb.mxu2 %v3817_v5  ;;  %v3913_v8 = vld [vmem:[%s5959_s3 + $0x28] sm:$0xff] }
 0x32e   : > { %3935 = vmatpush.msra.mxu1 %v3913_v8 }
 0x32f   : > { %v3835_v17 = vmax.f32 %v3799_v14, 0.0  ;;  %3881 = vmatpush.msrb.mxu2 %v3816_v54 }
 0x330   : > { %3882 = vmatmul.f32.vlgmr.msrb.gmra.mxu2 %v3839_v30  ;;  %3936 = vmatpush.msra.mxu1 %v3912_v45 }
 0x331   : > { %3898 = vmatpush.msrb.mxu3 %v3835_v17 }
 0x332   : > { %3937 = vmatpush.msra.mxu1 %v3911_v24 }
 0x333   : > { %3899 = vmatpush.msrb.mxu3 %v3834_v41 }
 0x334   : > { %3938 = vmatpush.msra.mxu1 %v3910_v12 }
 0x335   : > { %3900 = vmatpush.msrb.mxu3 %v3833_v2 }
 0x336   : > { %3939 = vmatpush.msra.mxu1 %v3909_v52 }
 0x337   : > { %3901 = vmatpush.msrb.mxu3 %v3832_v58 }
 0x338   : > { %4360 = vmatmul.msk.f32.vlgmr.msrb.gmra.mxu3 %vm3843_vm2, %v3840_v25  ;;  %3940 = vmatpush.msra.mxu1 %v3908_v11 }
 0x37e   : > { %v3863_v49 = vpop.f32.mrf.mxu1 }
 0x3b3   : > { %v3883_v44 = vpop.f32.mrf.mxu2 }
 0x3b4   : > { %v3884_v34 = vadd.f32 %v3883_v44, %v3863_v49 }
 0x3bb   : > { %v3903_v13 = vpop.f32.mrf.mxu3 }
 0x3bc   : > { %v3904_v38 = vadd.f32 %v3903_v13, %v3884_v34 }
 0x3be   : > { %3906 = vst [vmem:[#allocation3] sm:$0x1] %v3904_v38 }
 0x3c5   : > { %v3907_v22 = vld [vmem:[#allocation3] sm:$0x1] }
 0x3c6   : > { %3941 = vmatmul.f32.vlgmr.msra.gmra.mxu1 %v3907_v22 }
 0x443   : > { %v3942_v51 = vpop.f32.mrf.mxu1 }
 0x444   : > { %v3943_v1 = vadd.f32 %v3942_v51, %v3924_v29 }
 0x446   : > { %3945 = vst [vmem:[%s243_s14] sm:$0x1] %v3943_v1 }
 0x447   : > { %4434 = shalt.err (!%p4431_p3)
}
 0x448   : > { %4367 = dma.vmem_to_hbm [thread:$0]  (%p4544_p5), %s3958_s16, 16, %s3960_s17, %s3947_s18  }
 0x449 PF: > { %p4373_p4 = scmp.ge.s32.totalorder %s4469_s24, 2  ;;  %s3971_s29 = sand.u32 1, %s4457_s21  }
 0x44a   : > { %s3972_s10 = scalar_lea.sflag [#allocation5], %s3971_s29 }
 0x44b   : > { %p4370_p7 = pnand %p4373_p4, %p4548_p6 }
 0x44d   : > { %p4371_p8 = pneg %p4370_p7 }
 0x44f   : > { %4452 = dma.done.wait (%p4371_p8), %s3972_s10, 16  }
 0x450   : > { %4454 = vsyncadd (%p4371_p8), %s3972_s10, 4294967280  ;;  %p16_p9 = scmp.ge.s32.totalorder %s4531_s27, 4   ;;  %s6059_s21 = smov %s4461_s22 }
 0x451   : > { %s6060_s22 = smov %s4465_s23  ;;  %s6061_s23 = smov %s4542_s30 }
 0x452   : > { %s6062_s24 = smov %s4531_s27  ;;  %18 = sbr.rel (!%p16_p9) target bundleno = 3 (0x3), region = 87 }
 0x457   :  { %3977 = vsyncpa [#allocation5], 1 }
 0x458   :  { %3979 = vsyncpa [#allocation5 + $0x1], 1 }

</bundles_post_ra>
